<compile_context>
chip_gen: v7x
topology: tpu7x:2x2x1
jax: 0.10.0
libtpu: 0.0.40
codegen_flags: <defaults>
</compile_context>

<pallas_src>
import functools
import math

import jax
import jax.numpy as jnp
from jax.experimental import pallas as pl
from jax.experimental.pallas import tpu as pltpu


# ----------------------------- in-kernel helpers -----------------------------

def _layernorm(x, gamma, beta, eps=1e-5):
    mu = jnp.mean(x, axis=-1, keepdims=True)
    var = jnp.mean((x - mu) ** 2, axis=-1, keepdims=True)
    return (x - mu) * jax.lax.rsqrt(var + eps) * gamma + beta


def _gelu_exact(x):
    # matches torch.nn.functional.gelu (erf form), used by activation='gelu'
    return 0.5 * x * (1.0 + jax.lax.erf(x * 0.7071067811865476))


def _softmax(s):
    s = s - jnp.max(s, axis=-1, keepdims=True)
    e = jnp.exp(s)
    # EUP reciprocal (free slot vs. VALU divide); ~1e-3-level deviation accepted
    # alongside bf16 weights (no bit-exact parity claim).
    return e * pl.reciprocal(jnp.sum(e, axis=-1, keepdims=True), approx=True)


# ------------------------------- fused encoder kernel --------------------------

def encoder_kernel(
        # constants across depth
        patches_ref, w_pe_ref, posb_ref, norm_gb_ref,
        # per-layer (leading depth axis squeezed by BlockSpec)
        wqkv_ref, wo_ref, w1_ref, w2_ref, vec_ref,
        # output (resident across depth, written at the last step)
        xout_ref,
        # scratch: activation resident in VMEM across the depth axis
        x_scr,
        *, batch, seq, heads, head_dim, ff):
    l = pl.program_id(0)
    depth = pl.num_programs(0)
    B, N, H, hd, FF = batch, seq, heads, head_dim, ff
    D = H * hd
    BN = B * N

    # ---- patch embed + pos embed (only at the first depth step) ----
    @pl.when(l == 0)
    def _():
        x_scr[...] = (jnp.dot(patches_ref[...], w_pe_ref[...],
                              preferred_element_type=jnp.float32)
                      + posb_ref[...])

    x = x_scr[...]                                            # (B*N, D) f32

    # packed per-layer small vectors
    bqkv = vec_ref[0:1, 0:3 * D]
    bo = vec_ref[1:2, 0:D]
    ln1_g = vec_ref[2:3, 0:D]
    ln1_b = vec_ref[3:4, 0:D]
    b1 = vec_ref[4:5, 0:FF]
    b2 = vec_ref[5:6, 0:D]
    ln2_g = vec_ref[6:7, 0:D]
    ln2_b = vec_ref[7:8, 0:D]

    # ---- multi-head self-attention (heads batched, no per-head loop / concat) ----
    qkv = jnp.dot(x.astype(jnp.bfloat16), wqkv_ref[...],
                  preferred_element_type=jnp.float32) + bqkv      # (B*N, 3D)
    # head split: (B*N, 3D) -> (B, 3H, N, hd); 1/sqrt(hd) already folded into Q weights
    qkv = qkv.reshape(B, N, 3 * H, hd).transpose(0, 2, 1, 3)
    q = qkv[:, 0:H].reshape(B * H, N, hd)
    k = qkv[:, H:2 * H].reshape(B * H, N, hd)
    v = qkv[:, 2 * H:3 * H].reshape(B * H, N, hd)
    # scores: leading-batch dot_general contracting head_dim (no explicit k.T)
    s = jax.lax.dot_general(q, k, (((2,), (2,)), ((0,), (0,))),
                            preferred_element_type=jnp.float32)   # (B*H, N, N)
    p = _softmax(s)
    o = jax.lax.dot_general(p, v, (((2,), (1,)), ((0,), (0,))),
                            preferred_element_type=jnp.float32)   # (B*H, N, hd)
    o = o.reshape(B, H, N, hd).transpose(0, 2, 1, 3).reshape(BN, D)
    attn = jnp.dot(o.astype(jnp.bfloat16), wo_ref[...],
                   preferred_element_type=jnp.float32) + bo

    # post-norm residual 1
    x = _layernorm(x + attn, ln1_g, ln1_b)

    # ---- feed-forward (exact erf-GELU) ----
    h1 = _gelu_exact(jnp.dot(x.astype(jnp.bfloat16), w1_ref[...],
                             preferred_element_type=jnp.float32) + b1)
    ffo = jnp.dot(h1.astype(jnp.bfloat16), w2_ref[...],
                  preferred_element_type=jnp.float32) + b2

    # post-norm residual 2 -> stays resident in VMEM for the next layer
    x = _layernorm(x + ffo, ln2_g, ln2_b)
    x_scr[...] = x

    # ---- final LayerNorm at the last depth step ----
    @pl.when(l == depth - 1)
    def _():
        xout_ref[...] = _layernorm(x, norm_gb_ref[0:1, :], norm_gb_ref[1:2, :])


# ------------------------------- output projection kernel ----------------------

def proj_kernel(x_ref, wp_ref, bp_ref, o_ref):
    o_ref[...] = (jnp.dot(x_ref[...].astype(jnp.bfloat16), wp_ref[...],
                          preferred_element_type=jnp.float32)
                  + bp_ref[...])


# ------------------------------ pallas_call wrapper ---------------------------

def vision_encoder_forward(pixel_values, params, cfg):
    B, C, Himg, Wimg = pixel_values.shape
    p = cfg["patch_size"]
    D = cfg["hidden_size"]
    H = cfg["num_heads"]
    hd = D // H
    FF = cfg["intermediate_size"]
    Dout = cfg["out_hidden_size"]
    depth = cfg["depth"]
    h, w = Himg // p, Wimg // p
    N = h * w
    K = C * p * p
    BN = B * N

    # non-overlapping stride-p conv == patch extraction + matmul (layout glue in JAX)
    patches = pixel_values.reshape(B, C, h, p, w, p)
    patches = patches.transpose(0, 2, 4, 1, 3, 5).reshape(BN, K)

    pos = params["pos_embed"][0]                             # (Npos, D)
    Npos = pos.shape[0]
    if N <= Npos:
        pos_use = pos[:N]
    else:
        # TODO(synk): matches torch's repeat-and-truncate behavior; no interpolation.
        reps = math.ceil(N / Npos)
        pos_use = jnp.tile(pos, (reps, 1))[:N]
    # combine conv bias + positional embedding into a single (B*N, D) add
    posb = jnp.tile(pos_use + params["b_pe"], (B, 1))

    Vmax = params["vecs"].shape[-1]

    def const_spec(shape):
        n = len(shape)
        return pl.BlockSpec(shape, lambda l, n=n: (0,) * n)

    def layer_spec(shape):
        n = len(shape)
        return pl.BlockSpec((None,) + shape, lambda l, n=n: (l,) + (0,) * n)

    kernel = functools.partial(encoder_kernel, batch=B, seq=N, heads=H,
                               head_dim=hd, ff=FF)

    in_specs = [
        const_spec((BN, K)),            # patches
        const_spec((K, D)),             # patch-embed weight
        const_spec((BN, D)),            # conv bias + pos embed
        const_spec((2, D)),             # final norm gamma/beta
        layer_spec((D, 3 * D)),         # wqkv (bf16)
        layer_spec((D, D)),             # wo   (bf16)
        layer_spec((D, FF)),            # w1   (bf16)
        layer_spec((FF, D)),            # w2   (bf16)
        layer_spec((8, Vmax)),          # packed per-layer vectors (f32)
    ]

    x_final = pl.pallas_call(
        kernel,
        out_shape=jax.ShapeDtypeStruct((BN, D), jnp.float32),
        grid=(depth,),
        in_specs=in_specs,
        # output block constant over the depth axis -> resident, written at l==depth-1
        out_specs=const_spec((BN, D)),
        scratch_shapes=[pltpu.VMEM((BN, D), jnp.float32)],
        compiler_params=pltpu.CompilerParams(
            dimension_semantics=("arbitrary",),        # never "parallel": resident x/out
            vmem_limit_bytes=48 * 1024 * 1024),
    )(patches, params["w_pe"], posb, params["norm_gb"],
      params["wqkv"], params["wo"], params["w1"], params["w2"], params["vecs"])

    # output projection as a separate (parallel-over-batch) epilogue so wp/bp never
    # occupy VMEM inside the depth loop
    y = pl.pallas_call(
        proj_kernel,
        out_shape=jax.ShapeDtypeStruct((BN, Dout), jnp.float32),
        grid=(B,),
        in_specs=[pl.BlockSpec((N, D), lambda b: (b, 0)),
                  pl.BlockSpec((D, Dout), lambda b: (0, 0)),
                  pl.BlockSpec((1, Dout), lambda b: (0, 0))],
        out_specs=pl.BlockSpec((N, Dout), lambda b: (b, 0)),
        compiler_params=pltpu.CompilerParams(
            dimension_semantics=("parallel",)),
    )(x_final, params["wp"], params["bp"])

    return y.reshape(B, N, Dout)


# ------------------------------ parameter init --------------------------------

class _KeyGen:
    def __init__(self, key):
        self._key = key

    def __call__(self):
        self._key, sub = jax.random.split(self._key)
        return sub


def init_params(key, cfg):
    D = cfg["hidden_size"]
    Dout = cfg["out_hidden_size"]
    p = cfg["patch_size"]
    FF = cfg["intermediate_size"]
    depth = cfg["depth"]
    H = cfg["num_heads"]
    hd = D // H
    Npos = (cfg["window_size"] // p) ** 2
    kg = _KeyGen(key)
    nrm = lambda shape: 0.02 * jax.random.normal(kg(), shape, jnp.float32)

    # patch embed: torch Conv2d weight (D, 3, p, p), bias (D,) -> matmul layout
    conv_w = nrm((D, 3, p, p))
    conv_b = nrm((D,))
    params = {
        "w_pe": conv_w.reshape(D, 3 * p * p).T,              # (K, D)
        "b_pe": conv_b.reshape(1, D),
        "pos_embed": nrm((1, Npos, D)),                       # torch inits zeros; random here
        "norm_gb": jnp.concatenate([jnp.ones((1, D), jnp.float32),
                                    jnp.zeros((1, D), jnp.float32)], axis=0),
    }
    # output projection: torch Linear weight (Dout, D) -> (D, Dout), stored bf16
    out_w = nrm((Dout, D))
    out_b = nrm((Dout,))
    params["wp"] = out_w.T.astype(jnp.bfloat16)
    params["bp"] = out_b.reshape(1, Dout)

    Vmax = max(3 * D, FF)
    scale = 1.0 / math.sqrt(hd)

    wqkv_l, wo_l, w1_l, w2_l, vec_l = [], [], [], [], []
    for _ in range(depth):
        in_proj_w = nrm((3 * D, D))      # torch MHA in_proj (3D, D), rows [q|k|v]
        in_proj_b = nrm((3 * D,))
        out_proj_w = nrm((D, D))
        out_proj_b = nrm((D,))
        lin1_w = nrm((FF, D))
        lin1_b = nrm((FF,))
        lin2_w = nrm((D, FF))
        lin2_b = nrm((D,))

        wqkv = in_proj_w.T                                    # (D, 3D), cols [q|k|v]
        bqkv = in_proj_b                                      # (3D,)
        # fold 1/sqrt(head_dim) into the Q columns / Q bias (no in-kernel scaling)
        wqkv = wqkv.at[:, :D].multiply(scale)
        bqkv = bqkv.at[:D].multiply(scale)

        wqkv_l.append(wqkv.astype(jnp.bfloat16))
        wo_l.append(out_proj_w.T.astype(jnp.bfloat16))        # (D, D)
        w1_l.append(lin1_w.T.astype(jnp.bfloat16))            # (D, FF)
        w2_l.append(lin2_w.T.astype(jnp.bfloat16))            # (FF, D)

        # pack all per-layer small vectors into one (8, Vmax) f32 slab
        vec = jnp.zeros((8, Vmax), jnp.float32)
        vec = vec.at[0, :3 * D].set(bqkv)
        vec = vec.at[1, :D].set(out_proj_b)
        vec = vec.at[2, :D].set(jnp.ones((D,), jnp.float32))   # ln1 gamma
        vec = vec.at[3, :D].set(jnp.zeros((D,), jnp.float32))  # ln1 beta
        vec = vec.at[4, :FF].set(lin1_b)
        vec = vec.at[5, :D].set(lin2_b)
        vec = vec.at[6, :D].set(jnp.ones((D,), jnp.float32))   # ln2 gamma
        vec = vec.at[7, :D].set(jnp.zeros((D,), jnp.float32))  # ln2 beta
        vec_l.append(vec)

    params["wqkv"] = jnp.stack(wqkv_l, axis=0)
    params["wo"] = jnp.stack(wo_l, axis=0)
    params["w1"] = jnp.stack(w1_l, axis=0)
    params["w2"] = jnp.stack(w2_l, axis=0)
    params["vecs"] = jnp.stack(vec_l, axis=0)
    return params


# ----------------------------------- main --------------------------------------

if __name__ == "__main__":
    cfg = dict(
        hidden_size=32,
        out_hidden_size=64,
        patch_size=4,
        window_size=16,
        num_heads=4,
        intermediate_size=64,
        depth=2,
    )
    key = jax.random.PRNGKey(0)
    k_params, k_x = jax.random.split(key)
    params = init_params(k_params, cfg)

    # pixel_values: [B, C, H, W] NCHW, as produced by preprocess_image
    pixel_values = jax.random.normal(k_x, (2, 3, 16, 16), jnp.float32)

    out = vision_encoder_forward(pixel_values, params, cfg)
    out = jax.block_until_ready(out)

    expected_seq = (16 // cfg["patch_size"]) ** 2
    assert out.shape == (2, expected_seq, cfg["out_hidden_size"]), out.shape
    assert jnp.all(jnp.isfinite(out))
    print("KERNEL_OK")
</pallas_src>

<mosaic_0001>
module attributes {stable_mosaic.version = 11 : i64} {
  func.func @encoder_kernel(%arg0: i32, %arg1: memref<32x48xf32, #tpu.memory_space<vmem>>, %arg2: memref<48x32xf32, #tpu.memory_space<vmem>>, %arg3: memref<32x32xf32, #tpu.memory_space<vmem>>, %arg4: memref<2x32xf32, #tpu.memory_space<vmem>>, %arg5: memref<1x32x96xbf16, #tpu.memory_space<vmem>>, %arg6: memref<1x32x32xbf16, #tpu.memory_space<vmem>>, %arg7: memref<1x32x64xbf16, #tpu.memory_space<vmem>>, %arg8: memref<1x64x32xbf16, #tpu.memory_space<vmem>>, %arg9: memref<1x8x96xf32, #tpu.memory_space<vmem>>, %arg10: memref<32x32xf32, #tpu.memory_space<vmem>>, %arg11: memref<32x32xf32, #tpu.memory_space<vmem>>) attributes {dimension_semantics = [#tpu.dimension_semantics<arbitrary>], iteration_bounds = array<i64: 2>, scalar_prefetch = 0 : i64, scratch_operands = 1 : i64, tpu.core_type = #tpu.core_type<tc>, window_params = [{pipeline_mode = #tpu.pipeline_mode<synchronous>, transform_indices = @transform_0, window_bounds = array<i64: 32, 48>}, {pipeline_mode = #tpu.pipeline_mode<synchronous>, transform_indices = @transform_1, window_bounds = array<i64: 48, 32>}, {pipeline_mode = #tpu.pipeline_mode<synchronous>, transform_indices = @transform_2, window_bounds = array<i64: 32, 32>}, {pipeline_mode = #tpu.pipeline_mode<synchronous>, transform_indices = @transform_3, window_bounds = array<i64: 2, 32>}, {transform_indices = @transform_4, window_bounds = array<i64: 1, 32, 96>}, {transform_indices = @transform_5, window_bounds = array<i64: 1, 32, 32>}, {transform_indices = @transform_6, window_bounds = array<i64: 1, 32, 64>}, {transform_indices = @transform_7, window_bounds = array<i64: 1, 64, 32>}, {transform_indices = @transform_8, window_bounds = array<i64: 1, 8, 96>}, {pipeline_mode = #tpu.pipeline_mode<synchronous>, transform_indices = @transform_9, window_bounds = array<i64: 32, 32>}]} {
    %c0_i32 = arith.constant 0 : i32
    %0 = arith.cmpi eq, %arg0, %c0_i32 : i32
    %1 = arith.extui %0 : i1 to i32
    %c0_i32_0 = arith.constant 0 : i32
    %2 = arith.cmpi ne, %1, %c0_i32_0 : i32
    scf.if %2 {
      %c0_54 = arith.constant 0 : index
      %c0_55 = arith.constant 0 : index
      %125 = vector.load %arg1[%c0_54, %c0_55] : memref<32x48xf32, #tpu.memory_space<vmem>>, vector<32x48xf32>
      %c0_56 = arith.constant 0 : index
      %c0_57 = arith.constant 0 : index
      %126 = vector.load %arg2[%c0_56, %c0_57] : memref<48x32xf32, #tpu.memory_space<vmem>>, vector<48x32xf32>
      %cst_58 = arith.constant dense<0.000000e+00> : vector<32x32xf32>
      %127 = tpu.matmul %125, %126, %cst_58 {dimension_numbers = #tpu.dot_dimension_numbers<[1], [0], [0], [1], [0, 0, 1, 1], [], []>} : vector<32x48xf32>, vector<48x32xf32>, vector<32x32xf32> -> vector<32x32xf32>
      %c0_59 = arith.constant 0 : index
      %c0_60 = arith.constant 0 : index
      %128 = vector.load %arg3[%c0_59, %c0_60] : memref<32x32xf32, #tpu.memory_space<vmem>>, vector<32x32xf32>
      %129 = arith.addf %127, %128 : vector<32x32xf32>
      %c0_61 = arith.constant 0 : index
      %c0_62 = arith.constant 0 : index
      %130 = vector.load %arg11[%c0_61, %c0_62] : memref<32x32xf32, #tpu.memory_space<vmem>>, vector<32x32xf32>
      tpu.vector_store %arg11[%c0_61, %c0_62], %129 {strides = array<i32>} : memref<32x32xf32, #tpu.memory_space<vmem>>, vector<32x32xf32>,
    } else {
    }
    %c0 = arith.constant 0 : index
    %c0_1 = arith.constant 0 : index
    %3 = vector.load %arg11[%c0, %c0_1] : memref<32x32xf32, #tpu.memory_space<vmem>>, vector<32x32xf32>
    %c0_2 = arith.constant 0 : index
    %c0_3 = arith.constant 0 : index
    %c0_4 = arith.constant 0 : index
    %4 = vector.load %arg9[%c0_2, %c0_3, %c0_4] : memref<1x8x96xf32, #tpu.memory_space<vmem>>, vector<1x1x96xf32>
    %5 = vector.shape_cast %4 : vector<1x1x96xf32> to vector<1x96xf32>
    %c0_5 = arith.constant 0 : index
    %c1 = arith.constant 1 : index
    %c0_6 = arith.constant 0 : index
    %6 = vector.load %arg9[%c0_5, %c1, %c0_6] : memref<1x8x96xf32, #tpu.memory_space<vmem>>, vector<1x1x32xf32>
    %7 = vector.shape_cast %6 : vector<1x1x32xf32> to vector<1x32xf32>
    %c0_7 = arith.constant 0 : index
    %c2 = arith.constant 2 : index
    %c0_8 = arith.constant 0 : index
    %8 = vector.load %arg9[%c0_7, %c2, %c0_8] : memref<1x8x96xf32, #tpu.memory_space<vmem>>, vector<1x1x32xf32>
    %9 = vector.shape_cast %8 : vector<1x1x32xf32> to vector<1x32xf32>
    %c0_9 = arith.constant 0 : index
    %c3 = arith.constant 3 : index
    %c0_10 = arith.constant 0 : index
    %10 = vector.load %arg9[%c0_9, %c3, %c0_10] : memref<1x8x96xf32, #tpu.memory_space<vmem>>, vector<1x1x32xf32>
    %11 = vector.shape_cast %10 : vector<1x1x32xf32> to vector<1x32xf32>
    %c0_11 = arith.constant 0 : index
    %c4 = arith.constant 4 : index
    %c0_12 = arith.constant 0 : index
    %12 = vector.load %arg9[%c0_11, %c4, %c0_12] : memref<1x8x96xf32, #tpu.memory_space<vmem>>, vector<1x1x64xf32>
    %13 = vector.shape_cast %12 : vector<1x1x64xf32> to vector<1x64xf32>
    %c0_13 = arith.constant 0 : index
    %c5 = arith.constant 5 : index
    %c0_14 = arith.constant 0 : index
    %14 = vector.load %arg9[%c0_13, %c5, %c0_14] : memref<1x8x96xf32, #tpu.memory_space<vmem>>, vector<1x1x32xf32>
    %15 = vector.shape_cast %14 : vector<1x1x32xf32> to vector<1x32xf32>
    %c0_15 = arith.constant 0 : index
    %c6 = arith.constant 6 : index
    %c0_16 = arith.constant 0 : index
    %16 = vector.load %arg9[%c0_15, %c6, %c0_16] : memref<1x8x96xf32, #tpu.memory_space<vmem>>, vector<1x1x32xf32>
    %17 = vector.shape_cast %16 : vector<1x1x32xf32> to vector<1x32xf32>
    %c0_17 = arith.constant 0 : index
    %c7 = arith.constant 7 : index
    %c0_18 = arith.constant 0 : index
    %18 = vector.load %arg9[%c0_17, %c7, %c0_18] : memref<1x8x96xf32, #tpu.memory_space<vmem>>, vector<1x1x32xf32>
    %19 = vector.shape_cast %18 : vector<1x1x32xf32> to vector<1x32xf32>
    %20 = arith.truncf %3 : vector<32x32xf32> to vector<32x32xbf16>
    %c0_19 = arith.constant 0 : index
    %c0_20 = arith.constant 0 : index
    %c0_21 = arith.constant 0 : index
    %21 = vector.load %arg5[%c0_19, %c0_20, %c0_21] : memref<1x32x96xbf16, #tpu.memory_space<vmem>>, vector<1x32x96xbf16>
    %22 = vector.shape_cast %21 : vector<1x32x96xbf16> to vector<32x96xbf16>
    %cst = arith.constant dense<0.000000e+00> : vector<32x96xf32>
    %23 = tpu.matmul %20, %22, %cst {dimension_numbers = #tpu.dot_dimension_numbers<[1], [0], [0], [1], [0, 0, 1, 1], [], []>} : vector<32x32xbf16>, vector<32x96xbf16>, vector<32x96xf32> -> vector<32x96xf32>
    %24 = vector.broadcast %5 : vector<1x96xf32> to vector<32x96xf32>
    %25 = arith.addf %23, %24 : vector<32x96xf32>
    %26 = vector.shape_cast %25 : vector<32x96xf32> to vector<2x16x12x8xf32>
    %27 = tpu.transpose %26, [0, 2, 1, 3] : vector<2x16x12x8xf32> -> vector<2x12x16x8xf32>
    %28 = vector.extract_strided_slice %27 {offsets = [0, 0, 0, 0], sizes = [2, 4, 16, 8], strides = [1, 1, 1, 1]} : vector<2x12x16x8xf32> to vector<2x4x16x8xf32>
    %29 = vector.shape_cast %28 : vector<2x4x16x8xf32> to vector<8x16x8xf32>
    %30 = vector.extract_strided_slice %27 {offsets = [0, 4, 0, 0], sizes = [2, 4, 16, 8], strides = [1, 1, 1, 1]} : vector<2x12x16x8xf32> to vector<2x4x16x8xf32>
    %31 = vector.shape_cast %30 : vector<2x4x16x8xf32> to vector<8x16x8xf32>
    %32 = vector.extract_strided_slice %27 {offsets = [0, 8, 0, 0], sizes = [2, 4, 16, 8], strides = [1, 1, 1, 1]} : vector<2x12x16x8xf32> to vector<2x4x16x8xf32>
    %33 = vector.shape_cast %32 : vector<2x4x16x8xf32> to vector<8x16x8xf32>
    %cst_22 = arith.constant dense<0.000000e+00> : vector<8x16x16xf32>
    %34 = tpu.matmul %29, %31, %cst_22 {dimension_numbers = #tpu.dot_dimension_numbers<[2], [2], [1], [1], [0, 0, 0, 1, 1, 1], [0], [0]>} : vector<8x16x8xf32>, vector<8x16x8xf32>, vector<8x16x16xf32> -> vector<8x16x16xf32>
    %cst_23 = arith.constant dense<0xFF800000> : vector<8x16xf32>
    %35 = vector.multi_reduction <maximumf>, %34, %cst_23 [2] : vector<8x16x16xf32> to vector<8x16xf32>
    %36 = vector.shape_cast %35 : vector<8x16xf32> to vector<8x16x1xf32>
    %37 = vector.broadcast %36 : vector<8x16x1xf32> to vector<8x16x16xf32>
    %38 = arith.subf %34, %37 : vector<8x16x16xf32>
    %39 = math.exp %38 : vector<8x16x16xf32>
    %cst_24 = arith.constant dense<0.000000e+00> : vector<8x16xf32>
    %40 = vector.multi_reduction <add>, %39, %cst_24 [2] : vector<8x16x16xf32> to vector<8x16xf32>
    %41 = vector.shape_cast %40 : vector<8x16xf32> to vector<8x16x1xf32>
    %42 = tpu.reciprocal %41 {approx = true} : vector<8x16x1xf32> -> vector<8x16x1xf32>
    %43 = vector.broadcast %42 : vector<8x16x1xf32> to vector<8x16x16xf32>
    %44 = arith.mulf %39, %43 : vector<8x16x16xf32>
    %cst_25 = arith.constant dense<0.000000e+00> : vector<8x16x8xf32>
    %45 = tpu.matmul %44, %33, %cst_25 {dimension_numbers = #tpu.dot_dimension_numbers<[2], [1], [1], [2], [0, 0, 0, 1, 1, 2], [0], [0]>} : vector<8x16x16xf32>, vector<8x16x8xf32>, vector<8x16x8xf32> -> vector<8x16x8xf32>
    %46 = vector.shape_cast %45 : vector<8x16x8xf32> to vector<2x4x16x8xf32>
    %47 = tpu.transpose %46, [0, 2, 1, 3] : vector<2x4x16x8xf32> -> vector<2x16x4x8xf32>
    %48 = vector.shape_cast %47 : vector<2x16x4x8xf32> to vector<32x32xf32>
    %49 = arith.truncf %48 : vector<32x32xf32> to vector<32x32xbf16>
    %c0_26 = arith.constant 0 : index
    %c0_27 = arith.constant 0 : index
    %c0_28 = arith.constant 0 : index
    %50 = vector.load %arg6[%c0_26, %c0_27, %c0_28] : memref<1x32x32xbf16, #tpu.memory_space<vmem>>, vector<1x32x32xbf16>
    %51 = vector.shape_cast %50 : vector<1x32x32xbf16> to vector<32x32xbf16>
    %cst_29 = arith.constant dense<0.000000e+00> : vector<32x32xf32>
    %52 = tpu.matmul %49, %51, %cst_29 {dimension_numbers = #tpu.dot_dimension_numbers<[1], [0], [0], [1], [0, 0, 1, 1], [], []>} : vector<32x32xbf16>, vector<32x32xbf16>, vector<32x32xf32> -> vector<32x32xf32>
    %53 = vector.broadcast %7 : vector<1x32xf32> to vector<32x32xf32>
    %54 = arith.addf %52, %53 : vector<32x32xf32>
    %55 = arith.addf %3, %54 : vector<32x32xf32>
    %cst_30 = arith.constant dense<0.000000e+00> : vector<32xf32>
    %56 = vector.multi_reduction <add>, %55, %cst_30 [1] : vector<32x32xf32> to vector<32xf32>
    %57 = vector.shape_cast %56 : vector<32xf32> to vector<32x1xf32>
    %cst_31 = arith.constant 3.200000e+01 : f32
    %58 = vector.broadcast %cst_31 : f32 to vector<32x1xf32>
    %59 = arith.divf %57, %58 : vector<32x1xf32>
    %60 = vector.broadcast %59 : vector<32x1xf32> to vector<32x32xf32>
    %61 = arith.subf %55, %60 : vector<32x32xf32>
    %62 = arith.mulf %61, %61 : vector<32x32xf32>
    %cst_32 = arith.constant dense<0.000000e+00> : vector<32xf32>
    %63 = vector.multi_reduction <add>, %62, %cst_32 [1] : vector<32x32xf32> to vector<32xf32>
    %64 = vector.shape_cast %63 : vector<32xf32> to vector<32x1xf32>
    %cst_33 = arith.constant 3.200000e+01 : f32
    %65 = vector.broadcast %cst_33 : f32 to vector<32x1xf32>
    %66 = arith.divf %64, %65 : vector<32x1xf32>
    %67 = vector.broadcast %59 : vector<32x1xf32> to vector<32x32xf32>
    %68 = arith.subf %55, %67 : vector<32x32xf32>
    %cst_34 = arith.constant 9.99999974E-6 : f32
    %69 = vector.broadcast %cst_34 : f32 to vector<32x1xf32>
    %70 = arith.addf %66, %69 : vector<32x1xf32>
    %71 = math.rsqrt %70 : vector<32x1xf32>
    %72 = vector.broadcast %71 : vector<32x1xf32> to vector<32x32xf32>
    %73 = arith.mulf %68, %72 : vector<32x32xf32>
    %74 = vector.broadcast %9 : vector<1x32xf32> to vector<32x32xf32>
    %75 = arith.mulf %73, %74 : vector<32x32xf32>
    %76 = vector.broadcast %11 : vector<1x32xf32> to vector<32x32xf32>
    %77 = arith.addf %75, %76 : vector<32x32xf32>
    %78 = arith.truncf %77 : vector<32x32xf32> to vector<32x32xbf16>
    %c0_35 = arith.constant 0 : index
    %c0_36 = arith.constant 0 : index
    %c0_37 = arith.constant 0 : index
    %79 = vector.load %arg7[%c0_35, %c0_36, %c0_37] : memref<1x32x64xbf16, #tpu.memory_space<vmem>>, vector<1x32x64xbf16>
    %80 = vector.shape_cast %79 : vector<1x32x64xbf16> to vector<32x64xbf16>
    %cst_38 = arith.constant dense<0.000000e+00> : vector<32x64xf32>
    %81 = tpu.matmul %78, %80, %cst_38 {dimension_numbers = #tpu.dot_dimension_numbers<[1], [0], [0], [1], [0, 0, 1, 1], [], []>} : vector<32x32xbf16>, vector<32x64xbf16>, vector<32x64xf32> -> vector<32x64xf32>
    %82 = vector.broadcast %13 : vector<1x64xf32> to vector<32x64xf32>
    %83 = arith.addf %81, %82 : vector<32x64xf32>
    %cst_39 = arith.constant 5.000000e-01 : f32
    %84 = vector.broadcast %cst_39 : f32 to vector<32x64xf32>
    %85 = arith.mulf %84, %83 : vector<32x64xf32>
    %cst_40 = arith.constant 0.707106769 : f32
    %86 = vector.broadcast %cst_40 : f32 to vector<32x64xf32>
    %87 = arith.mulf %83, %86 : vector<32x64xf32>
    %88 = math.erf %87 : vector<32x64xf32>
    %cst_41 = arith.constant 1.000000e+00 : f32
    %89 = vector.broadcast %cst_41 : f32 to vector<32x64xf32>
    %90 = arith.addf %89, %88 : vector<32x64xf32>
    %91 = arith.mulf %85, %90 : vector<32x64xf32>
    %92 = arith.truncf %91 : vector<32x64xf32> to vector<32x64xbf16>
    %c0_42 = arith.constant 0 : index
    %c0_43 = arith.constant 0 : index
    %c0_44 = arith.constant 0 : index
    %93 = vector.load %arg8[%c0_42, %c0_43, %c0_44] : memref<1x64x32xbf16, #tpu.memory_space<vmem>>, vector<1x64x32xbf16>
    %94 = vector.shape_cast %93 : vector<1x64x32xbf16> to vector<64x32xbf16>
    %cst_45 = arith.constant dense<0.000000e+00> : vector<32x32xf32>
    %95 = tpu.matmul %92, %94, %cst_45 {dimension_numbers = #tpu.dot_dimension_numbers<[1], [0], [0], [1], [0, 0, 1, 1], [], []>} : vector<32x64xbf16>, vector<64x32xbf16>, vector<32x32xf32> -> vector<32x32xf32>
    %96 = vector.broadcast %15 : vector<1x32xf32> to vector<32x32xf32>
    %97 = arith.addf %95, %96 : vector<32x32xf32>
    %98 = arith.addf %77, %97 : vector<32x32xf32>
    %cst_46 = arith.constant dense<0.000000e+00> : vector<32xf32>
    %99 = vector.multi_reduction <add>, %98, %cst_46 [1] : vector<32x32xf32> to vector<32xf32>
    %100 = vector.shape_cast %99 : vector<32xf32> to vector<32x1xf32>
    %cst_47 = arith.constant 3.200000e+01 : f32
    %101 = vector.broadcast %cst_47 : f32 to vector<32x1xf32>
    %102 = arith.divf %100, %101 : vector<32x1xf32>
    %103 = vector.broadcast %102 : vector<32x1xf32> to vector<32x32xf32>
    %104 = arith.subf %98, %103 : vector<32x32xf32>
    %105 = arith.mulf %104, %104 : vector<32x32xf32>
    %cst_48 = arith.constant dense<0.000000e+00> : vector<32xf32>
    %106 = vector.multi_reduction <add>, %105, %cst_48 [1] : vector<32x32xf32> to vector<32xf32>
    %107 = vector.shape_cast %106 : vector<32xf32> to vector<32x1xf32>
    %cst_49 = arith.constant 3.200000e+01 : f32
    %108 = vector.broadcast %cst_49 : f32 to vector<32x1xf32>
    %109 = arith.divf %107, %108 : vector<32x1xf32>
    %110 = vector.broadcast %102 : vector<32x1xf32> to vector<32x32xf32>
    %111 = arith.subf %98, %110 : vector<32x32xf32>
    %cst_50 = arith.constant 9.99999974E-6 : f32
    %112 = vector.broadcast %cst_50 : f32 to vector<32x1xf32>
    %113 = arith.addf %109, %112 : vector<32x1xf32>
    %114 = math.rsqrt %113 : vector<32x1xf32>
    %115 = vector.broadcast %114 : vector<32x1xf32> to vector<32x32xf32>
    %116 = arith.mulf %111, %115 : vector<32x32xf32>
    %117 = vector.broadcast %17 : vector<1x32xf32> to vector<32x32xf32>
    %118 = arith.mulf %116, %117 : vector<32x32xf32>
    %119 = vector.broadcast %19 : vector<1x32xf32> to vector<32x32xf32>
    %120 = arith.addf %118, %119 : vector<32x32xf32>
    %c0_51 = arith.constant 0 : index
    %c0_52 = arith.constant 0 : index
    %121 = vector.load %arg11[%c0_51, %c0_52] : memref<32x32xf32, #tpu.memory_space<vmem>>, vector<32x32xf32>
    tpu.vector_store %arg11[%c0_51, %c0_52], %120 {strides = array<i32>} : memref<32x32xf32, #tpu.memory_space<vmem>>, vector<32x32xf32>,
    %c1_i32 = arith.constant 1 : i32
    %122 = arith.cmpi eq, %arg0, %c1_i32 : i32
    %123 = arith.extui %122 : i1 to i32
    %c0_i32_53 = arith.constant 0 : i32
    %124 = arith.cmpi ne, %123, %c0_i32_53 : i32
    scf.if %124 {
      %c0_54 = arith.constant 0 : index
      %c0_55 = arith.constant 0 : index
      %125 = vector.load %arg4[%c0_54, %c0_55] : memref<2x32xf32, #tpu.memory_space<vmem>>, vector<1x32xf32>
      %c1_56 = arith.constant 1 : index
      %c0_57 = arith.constant 0 : index
      %126 = vector.load %arg4[%c1_56, %c0_57] : memref<2x32xf32, #tpu.memory_space<vmem>>, vector<1x32xf32>
      %cst_58 = arith.constant dense<0.000000e+00> : vector<32xf32>
      %127 = vector.multi_reduction <add>, %120, %cst_58 [1] : vector<32x32xf32> to vector<32xf32>
      %128 = vector.shape_cast %127 : vector<32xf32> to vector<32x1xf32>
      %cst_59 = arith.constant 3.200000e+01 : f32
      %129 = vector.broadcast %cst_59 : f32 to vector<32x1xf32>
      %130 = arith.divf %128, %129 : vector<32x1xf32>
      %131 = vector.broadcast %130 : vector<32x1xf32> to vector<32x32xf32>
      %132 = arith.subf %120, %131 : vector<32x32xf32>
      %133 = arith.mulf %132, %132 : vector<32x32xf32>
      %cst_60 = arith.constant dense<0.000000e+00> : vector<32xf32>
      %134 = vector.multi_reduction <add>, %133, %cst_60 [1] : vector<32x32xf32> to vector<32xf32>
      %135 = vector.shape_cast %134 : vector<32xf32> to vector<32x1xf32>
      %cst_61 = arith.constant 3.200000e+01 : f32
      %136 = vector.broadcast %cst_61 : f32 to vector<32x1xf32>
      %137 = arith.divf %135, %136 : vector<32x1xf32>
      %138 = vector.broadcast %130 : vector<32x1xf32> to vector<32x32xf32>
      %139 = arith.subf %120, %138 : vector<32x32xf32>
      %cst_62 = arith.constant 9.99999974E-6 : f32
      %140 = vector.broadcast %cst_62 : f32 to vector<32x1xf32>
      %141 = arith.addf %137, %140 : vector<32x1xf32>
      %142 = math.rsqrt %141 : vector<32x1xf32>
      %143 = vector.broadcast %142 : vector<32x1xf32> to vector<32x32xf32>
      %144 = arith.mulf %139, %143 : vector<32x32xf32>
      %145 = vector.broadcast %125 : vector<1x32xf32> to vector<32x32xf32>
      %146 = arith.mulf %144, %145 : vector<32x32xf32>
      %147 = vector.broadcast %126 : vector<1x32xf32> to vector<32x32xf32>
      %148 = arith.addf %146, %147 : vector<32x32xf32>
      %c0_63 = arith.constant 0 : index
      %c0_64 = arith.constant 0 : index
      %149 = vector.load %arg10[%c0_63, %c0_64] : memref<32x32xf32, #tpu.memory_space<vmem>>, vector<32x32xf32>
      tpu.vector_store %arg10[%c0_63, %c0_64], %148 {strides = array<i32>} : memref<32x32xf32, #tpu.memory_space<vmem>>, vector<32x32xf32>,
    } else {
    }
    return
  }
  func.func @transform_0(%arg0: i32) -> (i32, i32) {
    %c0_i32 = arith.constant 0 : i32
    %c0_i32_0 = arith.constant 0 : i32
    %c0_i32_1 = arith.constant 0 : i32
    return %c0_i32, %c0_i32_0 : i32, i32
  }
  func.func @transform_1(%arg0: i32) -> (i32, i32) {
    %c0_i32 = arith.constant 0 : i32
    %c0_i32_0 = arith.constant 0 : i32
    %c0_i32_1 = arith.constant 0 : i32
    return %c0_i32, %c0_i32_0 : i32, i32
  }
  func.func @transform_2(%arg0: i32) -> (i32, i32) {
    %c0_i32 = arith.constant 0 : i32
    %c0_i32_0 = arith.constant 0 : i32
    %c0_i32_1 = arith.constant 0 : i32
    return %c0_i32, %c0_i32_0 : i32, i32
  }
  func.func @transform_3(%arg0: i32) -> (i32, i32) {
    %c0_i32 = arith.constant 0 : i32
    %c0_i32_0 = arith.constant 0 : i32
    %c0_i32_1 = arith.constant 0 : i32
    return %c0_i32, %c0_i32_0 : i32, i32
  }
  func.func @transform_4(%arg0: i32) -> (i32, i32, i32) {
    %c0_i32 = arith.constant 0 : i32
    %c0_i32_0 = arith.constant 0 : i32
    %c0_i32_1 = arith.constant 0 : i32
    return %arg0, %c0_i32, %c0_i32_0 : i32, i32, i32
  }
  func.func @transform_5(%arg0: i32) -> (i32, i32, i32) {
    %c0_i32 = arith.constant 0 : i32
    %c0_i32_0 = arith.constant 0 : i32
    %c0_i32_1 = arith.constant 0 : i32
    return %arg0, %c0_i32, %c0_i32_0 : i32, i32, i32
  }
  func.func @transform_6(%arg0: i32) -> (i32, i32, i32) {
    %c0_i32 = arith.constant 0 : i32
    %c0_i32_0 = arith.constant 0 : i32
    %c0_i32_1 = arith.constant 0 : i32
    return %arg0, %c0_i32, %c0_i32_0 : i32, i32, i32
  }
  func.func @transform_7(%arg0: i32) -> (i32, i32, i32) {
    %c0_i32 = arith.constant 0 : i32
    %c0_i32_0 = arith.constant 0 : i32
    %c0_i32_1 = arith.constant 0 : i32
    return %arg0, %c0_i32, %c0_i32_0 : i32, i32, i32
  }
  func.func @transform_8(%arg0: i32) -> (i32, i32, i32) {
    %c0_i32 = arith.constant 0 : i32
    %c0_i32_0 = arith.constant 0 : i32
    %c0_i32_1 = arith.constant 0 : i32
    return %arg0, %c0_i32, %c0_i32_0 : i32, i32, i32
  }
  func.func @transform_9(%arg0: i32) -> (i32, i32) {
    %c0_i32 = arith.constant 0 : i32
    %c0_i32_0 = arith.constant 0 : i32
    %c0_i32_1 = arith.constant 0 : i32
    return %c0_i32, %c0_i32_0 : i32, i32
  }
}

</mosaic_0001>

<bundles_post_ra>
// kernel: tpu_custom_call.1
= control target key start
LH: loop header
LB: loop body
LE: loop exit
PB: predicated region body
PF: predicated region fallthrough
CT: control target
= control target key end

     0   :  { %14 = vsyncpa [#allocation4], 0  ;;  %s7140_s0 = inlined_call_operand.vmem [shape: f32[32,48], index: 0, kind: input, shape index: {}]   ;;  %s7141_s1 = inlined_call_operand.vmem [shape: f32[48,32], index: 1, kind: input, shape index: {}]   ;;  %s7142_s2 = inlined_call_operand.vmem [shape: f32[32,32], index: 2, kind: input, shape index: {}]   ;;  %s7143_s3 = inlined_call_operand.vmem [shape: f32[2,32], index: 3, kind: input, shape index: {}]   ;;  %s7144_s4 = inlined_call_operand.vmem [shape: bf16[2,32,96], index: 4, kind: input, shape index: {}]   ;;  %s7145_s5 = inlined_call_operand.vmem [shape: bf16[2,32,32], index: 5, kind: input, shape index: {}]   ;;  %s7146_s6 = inlined_call_operand.vmem [shape: bf16[2,32,64], index: 6, kind: input, shape index: {}]   ;;  %s7147_s7 = inlined_call_operand.vmem [shape: bf16[2,64,32], index: 7, kind: input, shape index: {}]   ;;  %s7148_s8 = inlined_call_operand.hbm [shape: f32[2,8,96], index: 8, kind: input, shape index: {}]   ;;  %s7149_s9 = inlined_call_operand.hbm [shape: f32[32,32], index: 9, kind: output, shape index: {}]  }
   0x1   :  { %16 = vsyncpa [#allocation4 + $0x1], 0 }
   0x2   :  { %17 = vsyncpa [#allocation5], 0  ;;  %s6002_s30 = smov 0   ;;  %s6004_s10 = smov 0  }
   0x3   :  { %s6006_s11 = smov 0   ;;  %s6008_s12 = smov 0  }
   0x4 LB: > { %s6021_s13 = sadd.s32 4294967295, %s5931_s12   ;;  %s6024_s14 = sadd.s32 1, %s5931_s12   ;;  %s5931_s12 = sphi %s6008_s12, %s7159_s12   ;;  %s5927_s11 = sphi %s6006_s11, %s7158_s11   ;;  %s5923_s10 = sphi %s6004_s10, %s7157_s10   ;;  %s5919_s30 = sphi %s6002_s30, %s7156_s30  }
   0x5   : > { %s215_s15 = ssub.s32 %s5931_s12, %s6024_s14  ;;  %s218_s16 = sadd.s32 1, %s5927_s11 }
   0x6   : > { %p216_p0 = scmp.eq.s32.totalorder %s215_s15, 0  ;;  %p225_p1 = scmp.ne.s32.totalorder %s5927_s11, %s5923_s10 }
   0x7   : > { %p226_p2 = scmp.eq.s32.totalorder %s5931_s12, 0  ;;  %p231_p3 = scmp.ne.s32.totalorder %s5923_s10, %s5919_s30 }
   0x8   : > { %s6034_s17 = scalar_select %p216_p0, %s5927_s11, %s218_s16  }
   0x9   : > { %p227_p4 = por %p226_p2, %p225_p1  ;;  %p232_p5 = scmp.eq.s32.totalorder %s6021_s13, 0 }
   0xa   : > { %p5644_p6 = scmp.lt.s32.totalorder %s5931_s12, 2  ;;  %s320_s19 = sand.u32 1, %s5927_s11  }
   0xb   : > { %p6038_p7 = por %p232_p5, %p231_p3  ;;  %s5128_s20 = sshll.u32 %s320_s19, 3 }
   0xc   : > { %s5129_s21 = sshll.u32 %s5931_s12, 7  ;;  %s324_s25 = scalar_lea.vmem [#allocation3], %s5128_s20 }
   0xd   : > { %s6047_s24 = scalar_lea.hbm %s7148_s8, %s5129_s21  ;;  %s331_s26 = sshll.u32 %s324_s25, 4  ;;  %s6049_s26 = int_to_ptr.vmem [resolvable:$true] %s331_s26 }
   0xe   : > { %p6051_p8 = pnand %p5644_p6, %p227_p4  ;;  %s321_s28 = scalar_lea.sflag [#allocation4], %s320_s19 }
   0xf   : > { %s5837_s29 = scalar_lea.hbm %s6047_s24, 128  ;;  %s5842_s16 = scalar_lea.hbm %s7148_s8, 256 }
  0x10   : > { %p5838_p11 = scmp.ne.s32.totalorder %s6047_s24, %s5837_s29  ;;  %p5839_p12 = pneg %p6051_p8 }
  0x11   : > { %p5843_p1 = scmp.lt.u32.totalorder %s6047_s24, %s7148_s8  ;;  %p5844_p2 = scmp.lt.u32.totalorder %s5842_s16, %s5837_s29 }
  0x12   : > { %p5840_p13 = pnand %p5839_p12, %p5838_p11  ;;  %p5846_p4 = scmp.lt.u32.totalorder %s5837_s29, %s6047_s24 }
  0x13   : > { %p5845_p3 = por %p5844_p2, %p5843_p1 }
  0x14   : > { %p5841_p0 = pneg %p5840_p13 }
  0x15   : > { %p5847_p5 = por %p5846_p4, %p5845_p3 }
  0x17   : > { %p5848_p6 = pnand %p5847_p5, %p5841_p0 }
  0x19   : > { %5851 = shalt.err (!%p5848_p6)
}
  0x1a   : > { %s5852_s19 = scalar_lea.vmem %s6049_s26, 128  ;;  %s5933_s22 = smov [#allocation3]  }
  0x1b   : > { %p5853_p11 = scmp.ne.s32.totalorder %s6049_s26, %s5852_s19  ;;  %s5857_s23 = sshll.u32 %s5933_s22, 4  ;;  %s5858_s23 = int_to_ptr.vmem [resolvable:$false] %s5857_s23 }
  0x1c   : > { %s5859_s25 = scalar_lea.vmem %s5858_s23, 256  ;;  %p5860_p10 = scmp.lt.s32.totalorder %s6049_s26, %s5858_s23 }
  0x1d   : > { %p5855_p13 = pnand %p5853_p11, %p5839_p12  ;;  %p5861_p1 = scmp.lt.s32.totalorder %s5859_s25, %s5852_s19 }
  0x1f   : > { %p5856_p9 = pneg %p5855_p13  ;;  %p5862_p2 = por %p5861_p1, %p5860_p10 }
  0x21   : > { %p5863_p3 = pnand %p5862_p2, %p5856_p9 }
  0x23   : > { %5866 = shalt.err (!%p5863_p3)
}
  0x24   : > { %5643 = dma.hbm_to_vmem [thread:$0]  (!%p6051_p8), %s6047_s24, 128, %s6049_s26, %s321_s28  }
  0x25   : > { %p7152_p0 = scmp.lt.s32.totalorder %s5931_s12, 3  ;;  %p7153_p4 = scmp.ge.s32.totalorder %s5931_s12, 1 }
  0x27   : > { %p337_p12 = pnand %p7153_p4, %p7152_p0 }
  0x28   : > { %s342_s29 = sand.u32 (!%p337_p12), 1, %s5923_s10  }
  0x29   : > { %340 = sbr.rel (%p337_p12) target bundleno = 3325 (0xcfd), region = 56  ;;  %s5131_s30 = sshll.u32 (!%p337_p12), %s342_s29, 3 }
  0x2a   : > { %s343_s15 = scalar_lea.sflag (!%p337_p12), [#allocation4], %s342_s29  ;;  %s6087_s16 = scalar_lea.vmem (!%p337_p12), [#allocation3], %s5131_s30 }
  0x30   : > { %5910 = dma.done.wait (%p6038_p7), %s343_s15, 128  }
  0x31   : > { %5912 = vsyncadd (%p6038_p7), %s343_s15, 4294967168  ;;  %p396_p9 = scmp.lt.s32.totalorder %s6021_s13, 1  ;;  %p5140_p7 = scmp.ne.s32.totalorder %s6021_s13, 0 }
  0x32   : > { %v425_v0 = vld [vmem:[%s7141_s1] sm:$0xff] (!%p5140_p7)  ;;  %v426_v1 = vld [vmem:[%s7141_s1 + $0x8] sm:$0xff] (!%p5140_p7)  ;;  %v427_v2 = vld [vmem:[%s7141_s1 + $0x10] sm:$0xff] (!%p5140_p7)  ;;  %vm435_vm0 = vcmask (!%p5140_p7), 392192   ;;  %vm533_vm1 = vcmask (!%p5140_p7), 261120  }
  0x33   : > { %s397_s24 = scalar_select %p396_p9, %s6021_s13, 1 }
  0x34   : > { %420 = sbr.rel (%p5140_p7) target bundleno = 282 (0x11a), region = 64  ;;  %v5536_v3 = vpack.c.bf16 (!%p5140_p7), %v426_v1, %v425_v0  ;;  %v428_v4 = vld [vmem:[%s7141_s1 + $0x18] sm:$0xff] (!%p5140_p7)  ;;  %v429_v6 = vld [vmem:[%s7141_s1 + $0x20] sm:$0xff] (!%p5140_p7)  ;;  %v430_v7 = vld [vmem:[%s7141_s1 + $0x28] sm:$0xff] (!%p5140_p7) }
  0x35   : > { %s5274_s26 = sshll.u32 %s397_s24, 4  ;;  %s5277_s12 = sshll.u32 %s397_s24, 5  ;;  %v5540_v5 = vpack.c.bf16 (!%p5140_p7), %v428_v4, %v427_v2  ;;  %v421_v8 = vld [vmem:[%s7140_s0] sm:$0xff] (!%p5140_p7)  ;;  %v423_v9 = vld [vmem:[%s7140_s0 + $0x10] sm:$0xff] (!%p5140_p7)  ;;  %v5544_v10 = vpack.c.bf16 (!%p5140_p7), %v430_v7, %v429_v6  ;;  %v422_v11 = vld [vmem:[%s7140_s0 + $0x8] sm:$0xff] (!%p5140_p7) }
  0x36   : > { %s6098_s20 = scalar_lea.vmem %s7144_s4, %s5274_s26  ;;  %s6103_s22 = scalar_lea.vmem %s7145_s5, %s5274_s26  ;;  %5537 = vmatprep.subr.bf16.mxu0 (!%p5140_p7), %v5536_v3  ;;  %5628 = vmatprep.subr.bf16.mxu1 (!%p5140_p7), %v5536_v3  ;;  %v424_v12 = vld [vmem:[%s7140_s0 + $0x18] sm:$0xff] (!%p5140_p7)  ;;  %v432_v13 = vld [vmem:[%s7142_s2 + $0x8] sm:$0xff] (!%p5140_p7)  ;;  %v431_v15 = vld [vmem:[%s7142_s2] sm:$0xff] (!%p5140_p7) }
  0x37   : > { %s6108_s18 = scalar_lea.vmem %s7146_s6, %s5274_s26  ;;  %s6113_s15 = scalar_lea.vmem %s7147_s7, %s5277_s12  ;;  %5539 = vmatpush3.bf16.msra.mxu0 (!%p5140_p7), %v5536_v3  ;;  %5631 = vmatpush3.bf16.msra.mxu1 (!%p5140_p7), %v5536_v3  ;;  %v434_v14 = vld [vmem:[%s7142_s2 + $0x18] sm:$0xff] (!%p5140_p7)  ;;  %v433_v16 = vld [vmem:[%s7142_s2 + $0x10] sm:$0xff] (!%p5140_p7) }
  0x38   : > { %5541 = vmatprep.subr.bf16.mxu0 (!%p5140_p7), %v5540_v5  ;;  %5629 = vmatprep.subr.bf16.mxu1 (!%p5140_p7), %v5540_v5 }
  0x39   : > { %5382 = vmatprep.mubr.msk.f32.mxu0 (!%p5140_p7), %vm435_vm0, %v421_v8  ;;  %5385 = vmatprep.mubr.msk.f32.mxu1 (!%p5140_p7), %vm435_vm0, %v423_v9 }
  0x3b   : > { %5543 = vmatpush3.bf16.msra.mxu0 %v5540_v5  ;;  %5632 = vmatpush3.bf16.msra.mxu1 %v5540_v5 }
  0x3c   : > { %5545 = vmatprep.subr.bf16.mxu0 %v5544_v10  ;;  %5630 = vmatprep.subr.bf16.mxu1 %v5544_v10 }
  0x3f   : > { %5547 = vmatpush3.bf16.msra.mxu0 %v5544_v10  ;;  %5633 = vmatpush3.bf16.msra.mxu1 %v5544_v10 }
  0x42   : > { %5383 = vmatmul.mubr.msk.f32.vlgmr.msra.gmra.mrb[0].mxu0 %vm435_vm0, %v422_v11  ;;  %5386 = vmatmul.mubr.msk.f32.vlgmr.msra.gmra.mrb[0].mxu1 %vm435_vm0, %v424_v12 }
 0x115   : > { %v5384_v17 = vpop.f32.mrb[0].mxu0  ;;  %v5387_v18 = vpop.f32.mrb[0].mxu1 }
 0x116   : > { %v520_v19 = vadd.f32 %v5384_v17, %v432_v13  ;;  %v530_v20 = vadd.f32 %v5387_v18, %v434_v14  ;;  %v514_v21 = vpop.f32.mrb[1].mxu0  ;;  %v524_v22 = vpop.f32.mrb[1].mxu1 }
 0x117   : > { %v515_v23 = vadd.f32 %v514_v21, %v431_v15  ;;  %v525_v24 = vadd.f32 %v524_v22, %v433_v16 }
 0x118   : > { %535 = vst.msk [vmem:[#allocation2 + $0x8] sm:$0xff] %vm533_vm1, %v520_v19  ;;  %537 = vst.msk [vmem:[#allocation2 + $0x18] sm:$0xff] %vm533_vm1, %v530_v20 }
 0x119   : > { %534 = vst.msk [vmem:[#allocation2] sm:$0xff] %vm533_vm1, %v515_v23  ;;  %536 = vst.msk [vmem:[#allocation2 + $0x10] sm:$0xff] %vm533_vm1, %v525_v24 }
 0x11a PF: > { %v5727_v25 = vld [vmem:[%s6098_s20] sm:$0xff]   ;;  %v5728_v26 = vld [vmem:[%s6098_s20 + $0x8] sm:$0xff]   ;;  %vm572_vm2 = vcmask 261120   ;;  %s5934_s20 = smov 96   ;;  %s5935_s26 = smov 88   ;;  %v769_v47 = vlaneseq  ;;  %vm2396_vm3 = vcmask 64512  }
 0x11b   : > { %5388 = vmatprep.subr.bf16.mxu1 %v5727_v25  ;;  %v5145_v33 = vld [vmem:[%s6087_s16] ss:$0 sm:$0xff]  ;;  %s5936_s25 = smov 112   ;;  %s5937_s12 = smov 80   ;;  %v5945_v45 = vmov 1983009808   ;;  %vm6416_vm4 = vmpackc.low %vm2396_vm3, %vm2396_vm3 }
 0x11c   : > { %5389 = vmatpush3.bf16.msra.mxu1 %v5727_v25  ;;  %s5938_s29 = smov 72   ;;  %s5939_s30 = smov 120   ;;  %v767_v46 = vunpack.c.l.s4 %v5945_v45  ;;  %v5946_v49 = vmov 1934713408   ;;  %v770_v53 = vshrl.u32 %v769_v47, 7  ;;  %vm3093_vm5 = vcmask 130048  }
 0x11d   : > { %5390 = vmatprep.subr.bf16.mxu1 %v5728_v26  ;;  %s5940_s24 = smov 104   ;;  %s5941_s27 = smov 48   ;;  %v831_v50 = vunpack.c.l.s4 %v5946_v49  ;;  %vm4518_vm6 = vcmask 195584   ;;  %vm4808_vm7 = vcmask 523264  }
 0x11e   : > { %s5942_s28 = smov 64   ;;  %s5943_s21 = smov 40   ;;  %v768_v52 = vunpack.c.0.s8 %v767_v46 }
 0x11f   : > { %v539_v28 = vld [vmem:[#allocation2 + $0x8] sm:$0xff]  ;;  %v541_v31 = vld [vmem:[#allocation2 + $0x18] sm:$0xff]  ;;  %s5944_s19 = smov 56   ;;  %v832_v55 = vunpack.c.0.s8 %v831_v50  ;;  %s5947_s23 = smov 8  }
 0x120   : > { %v538_v27 = vld [vmem:[#allocation2] sm:$0xff]  ;;  %v540_v29 = vld [vmem:[#allocation2 + $0x10] sm:$0xff]  ;;  %5391 = vmatpush3.bf16.msra.mxu1 %v5728_v26  ;;  %v6227_v59 = vsub.s32 %v768_v52, %v770_v53  ;;  %p5267_p8 = scmp.ne.s32.totalorder %s6021_s13, 1 }
 0x121   : > { %v550_v30 = vpack.c.bf16 %v539_v28, %v538_v27  ;;  %v551_v32 = vpack.c.bf16 %v541_v31, %v540_v29  ;;  %v6231_v63 = vsub.s32 %v832_v55, %v770_v53 }
 0x123   : > { %5392 = vmatprep.mubr.msk.bf16.mxu1 %vm572_vm2, %v550_v30 }
 0x124   : > { %5393 = vmatmul.mubr.msk.bf16.vlgmr.msra.gmra.mrb[0].mxu1 %vm572_vm2, %v551_v32 }
 0x1f7   : > { %v5394_v34 = vpop.f32.mrb[0].mxu1 }
 0x1f8   : > { %v6167_v35 = vadd.f32 %v5394_v34, %v5145_v33  ;;  %v613_v36 = vpop.f32.mrb[1].mxu1 }
 0x1f9   : > { %v6169_v37 = vadd.f32 %v5145_v33, %v613_v36  ;;  %v5395_v38 = vpop.f32.mrb[2].mxu1 }
 0x1fa   : > { %672 = vrot.lane.b32.xlu0 %v6167_v35, %s5934_s20  ;;  %v616_v39 = vpop.f32.mrb[3].mxu1  ;;  %v6176_v40 = vadd.f32 %v5395_v38, %v5145_v33 }
 0x1fb   : > { %680 = vrot.lane.b32.xlu1 %v6169_v37, %s5935_s26  ;;  %v6182_v41 = vadd.f32 %v5145_v33, %v616_v39 }
 0x1fe   : > { %668 = vrot.lane.b32.xlu0 %v6169_v37, %s5934_s20 }
 0x1ff   : > { %644 = vrot.lane.b32.xlu1 %v6169_v37, %s5936_s25 }
 0x202   : > { %692 = vrot.lane.b32.xlu0 %v6169_v37, %s5937_s12 }
 0x203   : > { %674 = vrot.lane.b32.xlu1 %v6176_v40, %s5934_s20 }
 0x206   : > { %704 = vrot.lane.b32.xlu0 %v6169_v37, %s5938_s29 }
 0x207   : > { %686 = vrot.lane.b32.xlu1 %v6176_v40, %s5935_s26 }
 0x20a   : > { %632 = vrot.lane.b32.xlu0 %v6169_v37, %s5939_s30 }
 0x20b   : > { %682 = vrot.lane.b32.xlu1 %v6182_v41, %s5935_s26 }
 0x20e   : > { %656 = vrot.lane.b32.xlu0 %v6169_v37, %s5940_s24 }
 0x20f   : > { %694 = vrot.lane.b32.xlu1 %v6182_v41, %s5937_s12 }
 0x212   : > { %670 = vrot.lane.b32.xlu0 %v6182_v41, %s5934_s20  ;;  %s5948_s20 = smov 16  }
 0x213   : > { %706 = vrot.lane.b32.xlu1 %v6182_v41, %s5938_s29 }
 0x216   : > { %684 = vrot.lane.b32.xlu0 %v6167_v35, %s5935_s26  ;;  %s5949_s26 = smov 24  }
 0x217   : > { %698 = vrot.lane.b32.xlu1 %v6176_v40, %s5937_s12 }
 0x21a   : > { %696 = vrot.lane.b32.xlu0 %v6167_v35, %s5937_s12 }
 0x21b   : > { %634 = vrot.lane.b32.xlu1 %v6182_v41, %s5939_s30 }
 0x21e   : > { %646 = vrot.lane.b32.xlu0 %v6182_v41, %s5936_s25 }
 0x21f   : > { %658 = vrot.lane.b32.xlu1 %v6182_v41, %s5940_s24 }
 0x222   : > { %708 = vrot.lane.b32.xlu0 %v6167_v35, %s5938_s29 }
 0x223   : > { %710 = vrot.lane.b32.xlu1 %v6176_v40, %s5938_s29 }
 0x226   : > { %636 = vrot.lane.b32.xlu0 %v6167_v35, %s5939_s30 }
 0x227   : > { %648 = vrot.lane.b32.xlu1 %v6167_v35, %s5936_s25 }
 0x22a   : > { %660 = vrot.lane.b32.xlu0 %v6167_v35, %s5940_s24 }
 0x22b   : > { %638 = vrot.lane.b32.xlu1 %v6176_v40, %s5939_s30 }
 0x22e   : > { %650 = vrot.lane.b32.xlu0 %v6176_v40, %s5936_s25 }
 0x22f   : > { %662 = vrot.lane.b32.xlu1 %v6176_v40, %s5940_s24 }
 0x232   : > { %740 = vrot.lane.b32.xlu0 %v6169_v37, %s5941_s27 }
 0x233   : > { %716 = vrot.lane.b32.xlu1 %v6169_v37, %s5942_s28 }
 0x236   : > { %752 = vrot.lane.b32.xlu0 %v6169_v37, %s5943_s21 }
 0x237   : > { %728 = vrot.lane.b32.xlu1 %v6169_v37, %s5944_s19 }
 0x23a   : > { %718 = vrot.lane.b32.xlu0 %v6182_v41, %s5942_s28 }
 0x23b   : > { %730 = vrot.lane.b32.xlu1 %v6182_v41, %s5944_s19 }
 0x23f   : > { %742 = vrot.lane.b32.xlu1 %v6182_v41, %s5941_s27 }
 0x243   : > { %754 = vrot.lane.b32.xlu1 %v6182_v41, %s5943_s21 }
 0x26c   : > { %v6223_v42 = vpop.permute.xlu0 %672 }
 0x26d   : > { %v681_v43 = vpop.permute.xlu1 %680 }
 0x270   : > { %v669_v44 = vpop.permute.xlu0 %668 }
 0x271   : > { %v645_v48 = vpop.permute.xlu1 %644 }
 0x272   : > { %v764_v14 = vcombine.low %v6169_v37, %v645_v48  ;;  %v765_v15 = vcombine.high %v6169_v37, %v645_v48 }
 0x274   : > { %v693_v51 = vpop.permute.xlu0 %692  ;;  %v772_v28 = vrot.slane %v764_v14, %v6227_v59  ;;  %v779_v29 = vrot.slane %v765_v15, %v6227_v59 }
 0x275   : > { %v6225_v54 = vpop.permute.xlu1 %674  ;;  %v796_v56 = vcombine.low %v669_v44, %v693_v51  ;;  %v797_v57 = vcombine.high %v669_v44, %v693_v51 }
 0x277   : > { %v804_v0 = vrot.slane %v796_v56, %v6227_v59  ;;  %v811_v1 = vrot.slane %v797_v57, %v6227_v59 }
 0x278   : > { %v705_v58 = vpop.permute.xlu0 %704 }
 0x279   : > { %v812_v60 = vcombine.low %v681_v43, %v705_v58  ;;  %v813_v61 = vcombine.high %v681_v43, %v705_v58  ;;  %v6229_v62 = vpop.permute.xlu1 %686 }
 0x27b   : > { %v820_v2 = vrot.slane %v812_v60, %v6227_v59  ;;  %v827_v3 = vrot.slane %v813_v61, %v6227_v59 }
 0x27c   : > { %v633_v4 = vpop.permute.xlu0 %632 }
 0x27d   : > { %v860_v5 = vcombine.low %v804_v0, %v820_v2  ;;  %v861_v6 = vcombine.high %v804_v0, %v820_v2  ;;  %v876_v7 = vcombine.low %v811_v1, %v827_v3  ;;  %v877_v8 = vcombine.high %v811_v1, %v827_v3  ;;  %v683_v9 = vpop.permute.xlu1 %682 }
 0x27f   : > { %v868_v10 = vrot.slane %v860_v5, %v6231_v63  ;;  %v875_v11 = vrot.slane %v861_v6, %v6231_v63  ;;  %v884_v12 = vrot.slane %v876_v7, %v6231_v63  ;;  %v891_v13 = vrot.slane %v877_v8, %v6231_v63 }
 0x280   : > { %v657_v16 = vpop.permute.xlu0 %656 }
 0x281   : > { %v5151_v17 = vcombine.low %v868_v10, %v875_v11  ;;  %v5153_v18 = vcombine.high %v868_v10, %v875_v11  ;;  %v5155_v19 = vcombine.low %v884_v12, %v891_v13  ;;  %v5157_v20 = vcombine.high %v884_v12, %v891_v13  ;;  %v695_v21 = vpop.permute.xlu1 %694 }
 0x282   : > { %v780_v22 = vcombine.low %v633_v4, %v657_v16  ;;  %v781_v23 = vcombine.high %v633_v4, %v657_v16 }
 0x283   : > { %v6244_v24 = vrot.slane %v5151_v17, %v6227_v59  ;;  %v6247_v25 = vrot.slane %v5153_v18, %v6227_v59  ;;  %v6250_v26 = vrot.slane %v5155_v19, %v6227_v59  ;;  %v6253_v27 = vrot.slane %v5157_v20, %v6227_v59 }
 0x284   : > { %v788_v30 = vrot.slane %v780_v22, %v6227_v59  ;;  %v795_v31 = vrot.slane %v781_v23, %v6227_v59  ;;  %v671_v32 = vpop.permute.xlu0 %670 }
 0x285   : > { %v1000_v33 = vcombine.low %v671_v32, %v695_v21  ;;  %v1001_v34 = vcombine.high %v671_v32, %v695_v21  ;;  %v707_v36 = vpop.permute.xlu1 %706  ;;  %v1660_v37 = vcombine.low %v6244_v24, %v6247_v25  ;;  %v1692_v38 = vcombine.low %v6250_v26, %v6253_v27 }
 0x286   : > { %v828_v39 = vcombine.low %v772_v28, %v788_v30  ;;  %v829_v43 = vcombine.high %v772_v28, %v788_v30  ;;  %v844_v44 = vcombine.low %v779_v29, %v795_v31  ;;  %v845_v45 = vcombine.high %v779_v29, %v795_v31 }
 0x287   : > { %v1008_v46 = vrot.slane %v1000_v33, %v6227_v59  ;;  %v1015_v47 = vrot.slane %v1001_v34, %v6227_v59  ;;  %v1016_v48 = vcombine.low %v683_v9, %v707_v36  ;;  %v1017_v49 = vcombine.high %v683_v9, %v707_v36 }
 0x288   : > { %v836_v50 = vrot.slane %v828_v39, %v6231_v63  ;;  %v843_v51 = vrot.slane %v829_v43, %v6231_v63  ;;  %v852_v52 = vrot.slane %v844_v44, %v6231_v63  ;;  %v859_v53 = vrot.slane %v845_v45, %v6231_v63  ;;  %v6269_v55 = vpop.permute.xlu0 %684 }
 0x289   : > { %v1024_v56 = vrot.slane %v1016_v48, %v6227_v59  ;;  %v1031_v57 = vrot.slane %v1017_v49, %v6227_v59  ;;  %v699_v58 = vpop.permute.xlu1 %698  ;;  %v6274_v60 = vrot.slane %v1660_v37, %v6231_v63  ;;  %v6277_v61 = vrot.slane %v1692_v38, %v6231_v63 }
 0x28a   : > { %v5150_v0 = vcombine.low %v836_v50, %v843_v51  ;;  %v5152_v1 = vcombine.high %v836_v50, %v843_v51  ;;  %v5154_v2 = vcombine.low %v852_v52, %v859_v53  ;;  %v5156_v3 = vcombine.high %v852_v52, %v859_v53 }
 0x28b   : > { %v1064_v4 = vcombine.low %v1008_v46, %v1024_v56  ;;  %v1065_v5 = vcombine.high %v1008_v46, %v1024_v56  ;;  %v1080_v6 = vcombine.low %v1015_v47, %v1031_v57  ;;  %v1081_v7 = vcombine.high %v1015_v47, %v1031_v57 }
 0x28c   : > { %v6280_v8 = vrot.slane %v5150_v0, %v6227_v59  ;;  %v6283_v9 = vrot.slane %v5152_v1, %v6227_v59  ;;  %v6286_v10 = vrot.slane %v5154_v2, %v6227_v59  ;;  %v6289_v11 = vrot.slane %v5156_v3, %v6227_v59  ;;  %v697_v12 = vpop.permute.xlu0 %696 }
 0x28d   : > { %v1072_v13 = vrot.slane %v1064_v4, %v6231_v63  ;;  %v1079_v14 = vrot.slane %v1065_v5, %v6231_v63  ;;  %v1088_v15 = vrot.slane %v1080_v6, %v6231_v63  ;;  %v1095_v16 = vrot.slane %v1081_v7, %v6231_v63  ;;  %v635_v17 = vpop.permute.xlu1 %634 }
 0x28e   : > { %v1408_v18 = vcombine.low %v6225_v54, %v699_v58  ;;  %v1409_v19 = vcombine.high %v6225_v54, %v699_v58  ;;  %v1204_v20 = vcombine.low %v6223_v42, %v697_v12  ;;  %v1205_v21 = vcombine.high %v6223_v42, %v697_v12 }
 0x28f   : > { %v5159_v22 = vcombine.low %v1072_v13, %v1079_v14  ;;  %v5161_v23 = vcombine.high %v1072_v13, %v1079_v14  ;;  %v5163_v28 = vcombine.low %v1088_v15, %v1095_v16  ;;  %v5165_v29 = vcombine.high %v1088_v15, %v1095_v16 }
 0x290   : > { %v6300_v30 = vrot.slane %v1408_v18, %v6227_v59  ;;  %v6303_v31 = vrot.slane %v1409_v19, %v6227_v59  ;;  %v1212_v32 = vrot.slane %v1204_v20, %v6227_v59  ;;  %v1219_v33 = vrot.slane %v1205_v21, %v6227_v59  ;;  %v647_v54 = vpop.permute.xlu0 %646 }
 0x291   : > { %v6308_v34 = vrot.slane %v5159_v22, %v6227_v59  ;;  %v6311_v42 = vrot.slane %v5161_v23, %v6227_v59  ;;  %v6314_v36 = vrot.slane %v5163_v28, %v6227_v59  ;;  %v6317_v37 = vrot.slane %v5165_v29, %v6227_v59  ;;  %v659_v38 = vpop.permute.xlu1 %658 }
 0x292   : > { %v968_v39 = vcombine.low %v6182_v41, %v647_v54  ;;  %v969_v43 = vcombine.high %v6182_v41, %v647_v54  ;;  %v984_v44 = vcombine.low %v635_v17, %v659_v38  ;;  %v985_v45 = vcombine.high %v635_v17, %v659_v38 }
 0x293   : > { %v1644_v46 = vcombine.low %v6280_v8, %v6283_v9  ;;  %v1676_v47 = vcombine.low %v6286_v10, %v6289_v11  ;;  %v1712_v48 = vcombine.low %v6274_v60, %v6277_v61  ;;  %v1796_v49 = vcombine.low %v6308_v34, %v6311_v42 }
 0x294   : > { %v976_v50 = vrot.slane %v968_v39, %v6227_v59  ;;  %v983_v51 = vrot.slane %v969_v43, %v6227_v59  ;;  %v992_v41 = vrot.slane %v984_v44, %v6227_v59  ;;  %v999_v52 = vrot.slane %v985_v45, %v6227_v59  ;;  %v709_v53 = vpop.permute.xlu0 %708 }
 0x295   : > { %v1652_v56 = vrot.slane %v1644_v46, %v6231_v63  ;;  %v1684_v57 = vrot.slane %v1676_v47, %v6231_v63  ;;  %v1220_v58 = vcombine.low %v6269_v55, %v709_v53  ;;  %v1221_v0 = vcombine.high %v6269_v55, %v709_v53  ;;  %v711_v13 = vpop.permute.xlu1 %710 }
 0x296   : > { %v1032_v1 = vcombine.low %v976_v50, %v992_v41  ;;  %v1033_v2 = vcombine.high %v976_v50, %v992_v41  ;;  %v1048_v3 = vcombine.low %v983_v51, %v999_v52  ;;  %v1049_v4 = vcombine.high %v983_v51, %v999_v52 }
 0x297   : > { %v1708_v5 = vcombine.low %v1652_v56, %v1684_v57  ;;  %v1709_v6 = vcombine.high %v1652_v56, %v1684_v57  ;;  %v1228_v7 = vrot.slane %v1220_v58, %v6227_v59  ;;  %v1235_v12 = vrot.slane %v1221_v0, %v6227_v59 }
 0x298   : > { %v1040_v14 = vrot.slane %v1032_v1, %v6231_v63  ;;  %v1047_v15 = vrot.slane %v1033_v2, %v6231_v63  ;;  %v1056_v16 = vrot.slane %v1048_v3, %v6231_v63  ;;  %v1063_v17 = vrot.slane %v1049_v4, %v6231_v63  ;;  %v6360_v45 = vpop.permute.xlu0 %636 }
 0x299   : > { %5400 = vmatprep.mubr.msk.f32.mxu1 %vm2396_vm3, %v1708_v5  ;;  %5407 = vmatprep.mubr.msk.f32.mxu0 %vm2396_vm3, %v1709_v6  ;;  %v1268_v55 = vcombine.low %v1212_v32, %v1228_v7  ;;  %v1269_v18 = vcombine.high %v1212_v32, %v1228_v7  ;;  %v1284_v19 = vcombine.low %v1219_v33, %v1235_v12  ;;  %v649_v51 = vpop.permute.xlu1 %648 }
 0x29a   : > { %v5158_v20 = vcombine.low %v1040_v14, %v1047_v15  ;;  %v5160_v21 = vcombine.high %v1040_v14, %v1047_v15  ;;  %v5162_v22 = vcombine.low %v1056_v16, %v1063_v17  ;;  %v5164_v23 = vcombine.high %v1056_v16, %v1063_v17 }
 0x29b   : > { %v1276_v28 = vrot.slane %v1268_v55, %v6231_v63  ;;  %v1283_v29 = vrot.slane %v1269_v18, %v6231_v63  ;;  %v1285_v54 = vcombine.high %v1219_v33, %v1235_v12  ;;  %v1292_v38 = vrot.slane %v1284_v19, %v6231_v63 }
 0x29c   : > { %v6349_v39 = vrot.slane %v5158_v20, %v6227_v59  ;;  %v6352_v43 = vrot.slane %v5160_v21, %v6227_v59  ;;  %v6355_v32 = vrot.slane %v5162_v22, %v6227_v59  ;;  %v6358_v44 = vrot.slane %v5164_v23, %v6227_v59  ;;  %v661_v17 = vpop.permute.xlu0 %660 }
 0x29d   : > { %v1299_v46 = vrot.slane %v1285_v54, %v6231_v63  ;;  %v5171_v47 = vcombine.low %v1276_v28, %v1283_v29  ;;  %v5173_v33 = vcombine.high %v1276_v28, %v1283_v29  ;;  %v1424_v50 = vcombine.low %v6229_v62, %v711_v13  ;;  %v639_v20 = vpop.permute.xlu1 %638 }
 0x29e   : > { %v1780_v41 = vcombine.low %v6349_v39, %v6352_v43  ;;  %v1781_v52 = vcombine.high %v6349_v39, %v6352_v43  ;;  %v1812_v53 = vcombine.low %v6355_v32, %v6358_v44  ;;  %v1813_v56 = vcombine.high %v6355_v32, %v6358_v44 }
 0x29f   : > { %v6373_v57 = vrot.slane %v5171_v47, %v6227_v59  ;;  %v6376_v58 = vrot.slane %v5173_v33, %v6227_v59  ;;  %v5175_v0 = vcombine.low %v1292_v38, %v1299_v46  ;;  %v5177_v1 = vcombine.high %v1292_v38, %v1299_v46 }
 0x2a0   : > { %v1425_v2 = vcombine.high %v6229_v62, %v711_v13  ;;  %v1432_v3 = vrot.slane %v1424_v50, %v6227_v59  ;;  %v1172_v4 = vcombine.low %v6167_v35, %v649_v51  ;;  %v1173_v5 = vcombine.high %v6167_v35, %v649_v51 }
 0x2a1   : > { %v6383_v6 = vrot.slane %v5175_v0, %v6227_v59  ;;  %v6386_v7 = vrot.slane %v5177_v1, %v6227_v59  ;;  %v1804_v12 = vrot.slane %v1796_v49, %v6231_v63  ;;  %v1828_v14 = vcombine.low %v6314_v36, %v6317_v37 }
 0x2a2   : > { %v1439_v15 = vrot.slane %v1425_v2, %v6227_v59  ;;  %v1472_v62 = vcombine.low %v6300_v30, %v1432_v3  ;;  %v1473_v13 = vcombine.high %v6300_v30, %v1432_v3  ;;  %v6395_v16 = vrot.slane %v1172_v4, %v6227_v59  ;;  %v651_v3 = vpop.permute.xlu0 %650 }
 0x2a3   : > { %v6398_v55 = vrot.slane %v1173_v5, %v6227_v59  ;;  %v1836_v18 = vrot.slane %v1828_v14, %v6231_v63  ;;  %v1713_v49 = vcombine.high %v6274_v60, %v6277_v61  ;;  %v1661_v19 = vcombine.high %v6244_v24, %v6247_v25 }
 0x2a4   : > { %v1480_v21 = vrot.slane %v1472_v62, %v6231_v63  ;;  %v1487_v30 = vrot.slane %v1473_v13, %v6231_v63  ;;  %v1488_v22 = vcombine.low %v6303_v31, %v1439_v15  ;;  %v1489_v23 = vcombine.high %v6303_v31, %v1439_v15 }
 0x2a5   : > { %v1848_v28 = vcombine.low %v1804_v12, %v1836_v18  ;;  %v1849_v29 = vcombine.high %v1804_v12, %v1836_v18  ;;  %v1675_v54 = vrot.slane %v1661_v19, %v6231_v63  ;;  %v1693_v38 = vcombine.high %v6250_v26, %v6253_v27 }
 0x2a6   : > { %v1496_v46 = vrot.slane %v1488_v22, %v6231_v63  ;;  %v1503_v24 = vrot.slane %v1489_v23, %v6231_v63  ;;  %v5179_v25 = vcombine.low %v1480_v21, %v1487_v30  ;;  %v5181_v47 = vcombine.high %v1480_v21, %v1487_v30 }
 0x2a7   : > { %v5548_v31 = vpack.c.bf16 %v1848_v28, %v1712_v48  ;;  %v5554_v50 = vpack.c.bf16 %v1849_v29, %v1713_v49  ;;  %v1707_v51 = vrot.slane %v1693_v38, %v6231_v63  ;;  %v1797_v26 = vcombine.high %v6308_v34, %v6311_v42  ;;  %v663_v42 = vpop.permute.xlu1 %662 }
 0x2a8   : > { %v6427_v27 = vrot.slane %v5179_v25, %v6227_v59  ;;  %v6430_v0 = vrot.slane %v5181_v47, %v6227_v59  ;;  %v5183_v1 = vcombine.low %v1496_v46, %v1503_v24  ;;  %v5185_v2 = vcombine.high %v1496_v46, %v1503_v24 }
 0x2a9   : > { %5550 = vmatprep.subr.msk.bf16.mxu1 %vm6416_vm4, %v5548_v31  ;;  %5556 = vmatprep.subr.msk.bf16.mxu0 %vm6416_vm4, %v5554_v50  ;;  %v1714_v60 = vcombine.low %v1675_v54, %v1707_v51  ;;  %v1811_v61 = vrot.slane %v1797_v26, %v6231_v63  ;;  %v1829_v34 = vcombine.high %v6314_v36, %v6317_v37  ;;  %v741_v26 = vpop.permute.xlu0 %740 }
 0x2aa   : > { %v6440_v48 = vrot.slane %v5183_v1, %v6227_v59  ;;  %v6443_v4 = vrot.slane %v5185_v2, %v6227_v59  ;;  %5553 = vmatpush3.bf16.xpose.msk.msra.mxu1 %vm6416_vm4, %v5548_v31  ;;  %5559 = vmatpush3.bf16.xpose.msk.msra.mxu0 %vm6416_vm4, %v5554_v50  ;;  %v1715_v5 = vcombine.high %v1675_v54, %v1707_v51 }
 0x2ab   : > { %v1843_v12 = vrot.slane %v1829_v34, %v6231_v63  ;;  %v1188_v14 = vcombine.low %v6360_v45, %v661_v17  ;;  %v1189_v36 = vcombine.high %v6360_v45, %v661_v17  ;;  %v1376_v37 = vcombine.low %v6176_v40, %v651_v3  ;;  %v717_v1 = vpop.permute.xlu1 %716 }
 0x2ac   : > { %v1377_v15 = vcombine.high %v6176_v40, %v651_v3  ;;  %v1392_v62 = vcombine.low %v639_v20, %v663_v42  ;;  %v1393_v13 = vcombine.high %v639_v20, %v663_v42  ;;  %v1788_v18 = vrot.slane %v1780_v41, %v6231_v63 }
 0x2ad   : > { %v1850_v49 = vcombine.low %v1811_v61, %v1843_v12  ;;  %v1851_v19 = vcombine.high %v1811_v61, %v1843_v12  ;;  %v1196_v21 = vrot.slane %v1188_v14, %v6227_v59  ;;  %v1203_v30 = vrot.slane %v1189_v36, %v6227_v59 }
 0x2ae   : > { %v1384_v22 = vrot.slane %v1376_v37, %v6227_v59  ;;  %v1391_v45 = vrot.slane %v1377_v15, %v6227_v59  ;;  %v1400_v17 = vrot.slane %v1392_v62, %v6227_v59  ;;  %v1407_v23 = vrot.slane %v1393_v13, %v6227_v59 }
 0x2af   : > { %v5560_v20 = vpack.c.bf16 %v1850_v49, %v1714_v60  ;;  %v5566_v28 = vpack.c.bf16 %v1851_v19, %v1715_v5  ;;  %v1236_v29 = vcombine.low %v6395_v16, %v1196_v21  ;;  %v1237_v41 = vcombine.high %v6395_v16, %v1196_v21 }
 0x2b0   : > { %v1252_v54 = vcombine.low %v6398_v55, %v1203_v30  ;;  %v1253_v38 = vcombine.high %v6398_v55, %v1203_v30  ;;  %v1440_v46 = vcombine.low %v1384_v22, %v1400_v17  ;;  %v1441_v24 = vcombine.high %v1384_v22, %v1400_v17 }
 0x2b1   : > { %5562 = vmatprep.subr.msk.bf16.mxu1 %vm6416_vm4, %v5560_v20  ;;  %5568 = vmatprep.subr.msk.bf16.mxu0 %vm6416_vm4, %v5566_v28  ;;  %v1244_v25 = vrot.slane %v1236_v29, %v6231_v63  ;;  %v1251_v47 = vrot.slane %v1237_v41, %v6231_v63  ;;  %v1456_v31 = vcombine.low %v1391_v45, %v1407_v23  ;;  %v753_v41 = vpop.permute.xlu0 %752 }
 0x2b2   : > { %v1260_v50 = vrot.slane %v1252_v54, %v6231_v63  ;;  %v1267_v16 = vrot.slane %v1253_v38, %v6231_v63  ;;  %v1448_v51 = vrot.slane %v1440_v46, %v6231_v63  ;;  %v1455_v55 = vrot.slane %v1441_v24, %v6231_v63  ;;  %v729_v54 = vpop.permute.xlu1 %728 }
 0x2b3   : > { %v5170_v2 = vcombine.low %v1244_v25, %v1251_v47  ;;  %v5172_v3 = vcombine.high %v1244_v25, %v1251_v47  ;;  %v1457_v60 = vcombine.high %v1391_v45, %v1407_v23  ;;  %v1464_v61 = vrot.slane %v1456_v31, %v6231_v63 }
 0x2b4   : > { %v5174_v34 = vcombine.low %v1260_v50, %v1267_v16  ;;  %v5176_v42 = vcombine.high %v1260_v50, %v1267_v16  ;;  %v5178_v5 = vcombine.low %v1448_v51, %v1455_v55  ;;  %v5180_v12 = vcombine.high %v1448_v51, %v1455_v55 }
 0x2b5   : > { %v6480_v14 = vrot.slane %v5170_v2, %v6227_v59  ;;  %v6483_v36 = vrot.slane %v5172_v3, %v6227_v59  ;;  %v1471_v37 = vrot.slane %v1457_v60, %v6231_v63  ;;  %v1820_v15 = vrot.slane %v1812_v53, %v6231_v63 }
 0x2b6   : > { %v6491_v62 = vrot.slane %v5174_v34, %v6227_v59  ;;  %v6494_v13 = vrot.slane %v5176_v42, %v6227_v59  ;;  %v6497_v49 = vrot.slane %v5178_v5, %v6227_v59  ;;  %v6500_v19 = vrot.slane %v5180_v12, %v6227_v59 }
 0x2b7   : > { %v5182_v21 = vcombine.low %v1464_v61, %v1471_v37  ;;  %v5184_v30 = vcombine.high %v1464_v61, %v1471_v37  ;;  %v1844_v22 = vcombine.low %v1788_v18, %v1820_v15  ;;  %v1845_v45 = vcombine.high %v1788_v18, %v1820_v15  ;;  %v6545_v61 = vpop.permute.xlu1 %730 }
 0x2b8   : > { %v2188_v17 = vcombine.low %v6497_v49, %v6500_v19  ;;  %v2189_v53 = vcombine.high %v6497_v49, %v6500_v19  ;;  %v900_v23 = vcombine.low %v717_v1, %v741_v26  ;;  %v901_v29 = vcombine.high %v717_v1, %v741_v26 }
 0x2b9   : > { %v6507_v38 = vrot.slane %v5182_v21, %v6227_v59  ;;  %v6510_v46 = vrot.slane %v5184_v30, %v6227_v59  ;;  %5401 = vmatmul.mubr.msk.f32.vlgmr.msra.gmra.mrb[4].mxu1 %vm2396_vm3, %v1844_v22  ;;  %5408 = vmatmul.mubr.msk.f32.vlgmr.msra.gmra.mrb[0].mxu0 %vm2396_vm3, %v1845_v45  ;;  %v1645_v18 = vcombine.high %v6280_v8, %v6283_v9 }
 0x2ba   : > { %5565 = vmatpush3.bf16.xpose.msk.msra.mxu1 %vm6416_vm4, %v5560_v20  ;;  %5571 = vmatpush3.bf16.xpose.msk.msra.mxu0 %vm6416_vm4, %v5566_v28  ;;  %v908_v24 = vrot.slane %v900_v23, %v6227_v59  ;;  %v915_v25 = vrot.slane %v901_v29, %v6227_v59  ;;  %v1677_v47 = vcombine.high %v6286_v10, %v6289_v11 }
 0x2bb   : > { %v2220_v31 = vcombine.low %v6507_v38, %v6510_v46  ;;  %v2221_v50 = vcombine.high %v6507_v38, %v6510_v46  ;;  %v1659_v8 = vrot.slane %v1645_v18, %v6231_v63  ;;  %v916_v9 = vcombine.low %v729_v54, %v753_v41 }
 0x2bc   : > { %v1691_v20 = vrot.slane %v1677_v47, %v6231_v63  ;;  %v917_v16 = vcombine.high %v729_v54, %v753_v41  ;;  %v2068_v28 = vcombine.low %v6373_v57, %v6376_v58  ;;  %v2100_v51 = vcombine.low %v6383_v6, %v6386_v7 }
 0x2bd   : > { %v924_v10 = vrot.slane %v916_v9, %v6227_v59  ;;  %v2204_v11 = vcombine.low %v6427_v27, %v6430_v0  ;;  %v2236_v55 = vcombine.low %v6440_v48, %v6443_v4  ;;  %v1795_v26 = vrot.slane %v1781_v52, %v6231_v63 }
 0x2be   : > { %v1710_v1 = vcombine.low %v1659_v8, %v1691_v20  ;;  %v1711_v2 = vcombine.high %v1659_v8, %v1691_v20  ;;  %v931_v3 = vrot.slane %v917_v16, %v6227_v59  ;;  %v2076_v60 = vrot.slane %v2068_v28, %v6231_v63  ;;  %v743_v20 = vpop.permute.xlu1 %742 }
 0x2bf   : > { %v932_v34 = vcombine.low %v908_v24, %v924_v10  ;;  %v933_v42 = vcombine.high %v908_v24, %v924_v10  ;;  %v2108_v5 = vrot.slane %v2100_v51, %v6231_v63  ;;  %v2212_v12 = vrot.slane %v2204_v11, %v6231_v63 }
 0x2c0   : > { %5414 = vmatprep.mubr.msk.f32.mxu1 %vm2396_vm3, %v1710_v1  ;;  %5421 = vmatprep.mubr.msk.f32.mxu0 %vm2396_vm3, %v1711_v2  ;;  %v948_v39 = vcombine.low %v915_v25, %v931_v3  ;;  %v949_v43 = vcombine.high %v915_v25, %v931_v3  ;;  %v2244_v52 = vrot.slane %v2236_v55, %v6231_v63 }
 0x2c1   : > { %v940_v37 = vrot.slane %v932_v34, %v6231_v63  ;;  %v947_v15 = vrot.slane %v933_v42, %v6231_v63  ;;  %v2120_v21 = vcombine.low %v2076_v60, %v2108_v5  ;;  %v2121_v30 = vcombine.high %v2076_v60, %v2108_v5 }
 0x2c2   : > { %v956_v22 = vrot.slane %v948_v39, %v6231_v63  ;;  %v963_v45 = vrot.slane %v949_v43, %v6231_v63  ;;  %v2256_v23 = vcombine.low %v2212_v12, %v2244_v52  ;;  %v2257_v29 = vcombine.high %v2212_v12, %v2244_v52  ;;  %v755_v34 = vpop.permute.xlu1 %754 }
 0x2c3   : > { %v1852_v41 = vcombine.low %v940_v37, %v947_v15  ;;  %v5166_v54 = vcombine.high %v940_v37, %v947_v15  ;;  %v1827_v18 = vrot.slane %v1813_v56, %v6231_v63  ;;  %v2069_v24 = vcombine.high %v6373_v57, %v6376_v58  ;;  %v719_v56 = vpop.permute.xlu0 %718 }
 0x2c4   : > { %v1868_v25 = vcombine.low %v956_v22, %v963_v45  ;;  %v5167_v47 = vcombine.high %v956_v22, %v963_v45  ;;  %v5572_v8 = vpack.c.bf16 %v2256_v23, %v2120_v21  ;;  %v5578_v9 = vpack.c.bf16 %v2257_v29, %v2121_v30 }
 0x2c5   : > { %v6563_v16 = vrot.slane %v1852_v41, %v6227_v59  ;;  %v6566_v28 = vrot.slane %v5166_v54, %v6227_v59  ;;  %v1846_v51 = vcombine.low %v1795_v26, %v1827_v18  ;;  %v1847_v10 = vcombine.high %v1795_v26, %v1827_v18 }
 0x2c6   : > { %v6569_v11 = vrot.slane %v1868_v25, %v6227_v59  ;;  %v6572_v32 = vrot.slane %v5167_v47, %v6227_v59  ;;  %5574 = vmatprep.subr.msk.bf16.mxu1 %vm6416_vm4, %v5572_v8  ;;  %5580 = vmatprep.subr.msk.bf16.mxu0 %vm6416_vm4, %v5578_v9  ;;  %v2083_v44 = vrot.slane %v2069_v24, %v6231_v63 }
 0x2c7   : > { %5415 = vmatmul.mubr.msk.f32.vlgmr.msra.gmra.mrb[6].mxu1 %vm2396_vm3, %v1846_v51  ;;  %5422 = vmatmul.mubr.msk.f32.vlgmr.msra.gmra.mrb[2].mxu0 %vm2396_vm3, %v1847_v10  ;;  %v2101_v57 = vcombine.high %v6383_v6, %v6386_v7  ;;  %v2205_v58 = vcombine.high %v6427_v27, %v6430_v0  ;;  %v2237_v55 = vcombine.high %v6440_v48, %v6443_v4 }
 0x2c8   : > { %5577 = vmatpush3.bf16.xpose.msk.msra.mxu1 %vm6416_vm4, %v5572_v8  ;;  %5583 = vmatpush3.bf16.xpose.msk.msra.mxu0 %vm6416_vm4, %v5578_v9  ;;  %v2052_v26 = vcombine.low %v6480_v14, %v6483_v36  ;;  %v2084_v1 = vcombine.low %v6491_v62, %v6494_v13  ;;  %v1104_v2 = vcombine.low %v719_v56, %v743_v20 }
 0x2c9   : > { %v2115_v6 = vrot.slane %v2101_v57, %v6231_v63  ;;  %v2219_v7 = vrot.slane %v2205_v58, %v6231_v63  ;;  %v2251_v27 = vrot.slane %v2237_v55, %v6231_v63  ;;  %v1105_v0 = vcombine.high %v719_v56, %v743_v20 }
 0x2ca   : > { %v2060_v48 = vrot.slane %v2052_v26, %v6231_v63  ;;  %v2092_v4 = vrot.slane %v2084_v1, %v6231_v63  ;;  %v1112_v3 = vrot.slane %v1104_v2, %v6227_v59  ;;  %v2196_v60 = vrot.slane %v2188_v17, %v6231_v63 }
 0x2cb   : > { %v2122_v42 = vcombine.low %v2083_v44, %v2115_v6  ;;  %v2258_v5 = vcombine.low %v2219_v7, %v2251_v27  ;;  %v2123_v12 = vcombine.high %v2083_v44, %v2115_v6  ;;  %v2259_v39 = vcombine.high %v2219_v7, %v2251_v27 }
 0x2cc   : > { %v2116_v43 = vcombine.low %v2060_v48, %v2092_v4  ;;  %v2117_v52 = vcombine.high %v2060_v48, %v2092_v4  ;;  %v1119_v37 = vrot.slane %v1105_v0, %v6227_v59  ;;  %v2228_v15 = vrot.slane %v2220_v31, %v6231_v63 }
 0x2cd   : > { %v5584_v21 = vpack.c.bf16 %v2258_v5, %v2122_v42  ;;  %v5590_v30 = vpack.c.bf16 %v2259_v39, %v2123_v12  ;;  %v1120_v22 = vcombine.low %v6545_v61, %v755_v34  ;;  %v1121_v17 = vcombine.high %v6545_v61, %v755_v34 }
 0x2ce   : > { %5428 = vmatprep.mubr.msk.f32.mxu1 %vm2396_vm3, %v2116_v43  ;;  %5435 = vmatprep.mubr.msk.f32.mxu0 %vm2396_vm3, %v2117_v52  ;;  %v2252_v45 = vcombine.low %v2196_v60, %v2228_v15  ;;  %v2253_v23 = vcombine.high %v2196_v60, %v2228_v15  ;;  %v2053_v29 = vcombine.high %v6480_v14, %v6483_v36 }
 0x2cf   : > { %5586 = vmatprep.subr.msk.bf16.mxu1 %vm6416_vm4, %v5584_v21  ;;  %5592 = vmatprep.subr.msk.bf16.mxu0 %vm6416_vm4, %v5590_v30  ;;  %v1128_v31 = vrot.slane %v1120_v22, %v6227_v59  ;;  %v1135_v41 = vrot.slane %v1121_v17, %v6227_v59  ;;  %v2085_v61 = vcombine.high %v6491_v62, %v6494_v13 }
 0x2d0   : > { %5429 = vmatmul.mubr.msk.f32.vlgmr.msra.gmra.mrb[8].mxu1 %vm2396_vm3, %v2252_v45  ;;  %5436 = vmatmul.mubr.msk.f32.vlgmr.msra.gmra.mrb[4].mxu0 %vm2396_vm3, %v2253_v23  ;;  %v2067_v54 = vrot.slane %v2053_v29, %v6231_v63  ;;  %v2203_v14 = vrot.slane %v2189_v53, %v6231_v63  ;;  %v2235_v36 = vrot.slane %v2221_v50, %v6231_v63 }
 0x2d1   : > { %5589 = vmatpush3.bf16.xpose.msk.msra.mxu1 %vm6416_vm4, %v5584_v21  ;;  %5595 = vmatpush3.bf16.xpose.msk.msra.mxu0 %vm6416_vm4, %v5590_v30  ;;  %v1136_v62 = vcombine.low %v1112_v3, %v1128_v31  ;;  %v1137_v13 = vcombine.high %v1112_v3, %v1128_v31  ;;  %v1152_v18 = vcombine.low %v1119_v37, %v1135_v41 }
 0x2d2   : > { %v1153_v24 = vcombine.high %v1119_v37, %v1135_v41  ;;  %v2099_v25 = vrot.slane %v2085_v61, %v6231_v63  ;;  %v2254_v38 = vcombine.low %v2203_v14, %v2235_v36  ;;  %v1884_v33 = vcombine.low %v6563_v16, %v6566_v28 }
 0x2d3   : > { %v1144_v49 = vrot.slane %v1136_v62, %v6231_v63  ;;  %v1151_v19 = vrot.slane %v1137_v13, %v6231_v63  ;;  %v1160_v53 = vrot.slane %v1152_v18, %v6231_v63  ;;  %v1900_v20 = vcombine.low %v6569_v11, %v6572_v32 }
 0x2d4   : > { %v1167_v46 = vrot.slane %v1153_v24, %v6231_v63  ;;  %v2118_v50 = vcombine.low %v2067_v54, %v2099_v25  ;;  %v2119_v47 = vcombine.high %v2067_v54, %v2099_v25  ;;  %v1885_v51 = vcombine.high %v6563_v16, %v6566_v28 }
 0x2d5   : > { %v1920_v8 = vcombine.low %v1144_v49, %v1151_v19  ;;  %v5168_v9 = vcombine.high %v1144_v49, %v1151_v19  ;;  %v2255_v56 = vcombine.high %v2203_v14, %v2235_v36  ;;  %v1901_v26 = vcombine.high %v6569_v11, %v6572_v32 }
 0x2d6   : > { %v1936_v10 = vcombine.low %v1160_v53, %v1167_v46  ;;  %v5169_v44 = vcombine.high %v1160_v53, %v1167_v46  ;;  %5442 = vmatprep.mubr.msk.f32.mxu1 %vm2396_vm3, %v2118_v50  ;;  %5449 = vmatprep.mubr.msk.f32.mxu0 %vm2396_vm3, %v2119_v47  ;;  %v1899_v55 = vrot.slane %v1885_v51, %v6231_v63 }
 0x2d7   : > { %v1927_v57 = vrot.slane %v1920_v8, %v6227_v59  ;;  %v1935_v58 = vrot.slane %v5168_v9, %v6227_v59  ;;  %v1892_v28 = vrot.slane %v1884_v33, %v6231_v63  ;;  %v1908_v2 = vrot.slane %v1900_v20, %v6231_v63 }
 0x2d8   : > { %v1943_v1 = vrot.slane %v1936_v10, %v6227_v59  ;;  %v1951_v16 = vrot.slane %v5169_v44, %v6227_v59  ;;  %5443 = vmatmul.mubr.msk.f32.vlgmr.msra.gmra.mrb[10].mxu1 %vm2396_vm3, %v2254_v38  ;;  %5450 = vmatmul.mubr.msk.f32.vlgmr.msra.gmra.mrb[6].mxu0 %vm2396_vm3, %v2255_v56  ;;  %v1915_v7 = vrot.slane %v1901_v26, %v6231_v63 }
 0x2d9   : > { %v1952_v6 = vcombine.low %v1927_v57, %v1935_v58  ;;  %v1953_v27 = vcombine.high %v1927_v57, %v1935_v58  ;;  %v1916_v34 = vcombine.low %v1892_v28, %v1908_v2  ;;  %v1917_v15 = vcombine.high %v1892_v28, %v1908_v2 }
 0x2da   : > { %v1968_v0 = vcombine.low %v1943_v1, %v1951_v16  ;;  %v1969_v48 = vcombine.high %v1943_v1, %v1951_v16  ;;  %v1919_v4 = vcombine.high %v1899_v55, %v1915_v7  ;;  %v1918_v42 = vcombine.low %v1899_v55, %v1915_v7 }
 0x2db   : > { %v1960_v11 = vrot.slane %v1952_v6, %v6231_v63  ;;  %v1967_v32 = vrot.slane %v1953_v27, %v6231_v63 }
 0x2dc   : > { %v1976_v3 = vrot.slane %v1968_v0, %v6231_v63  ;;  %v1983_v60 = vrot.slane %v1969_v48, %v6231_v63 }
 0x2de   : > { %v1984_v5 = vcombine.low %v1960_v11, %v1976_v3  ;;  %v1986_v12 = vcombine.low %v1967_v32, %v1983_v60  ;;  %v1985_v39 = vcombine.high %v1960_v11, %v1976_v3  ;;  %v1987_v43 = vcombine.high %v1967_v32, %v1983_v60 }
 0x2e0   : > { %v5596_v52 = vpack.c.bf16 %v1984_v5, %v1916_v34  ;;  %v5604_v37 = vpack.c.bf16 %v1986_v12, %v1918_v42  ;;  %v6668_v21 = vpack.c.bf16 %v1987_v43, %v1919_v4  ;;  %v6670_v30 = vpack.c.bf16 %v1985_v39, %v1917_v15 }
 0x2e2   : > { %5597 = vmatprep.subr.bf16.mxu1 %v5596_v52  ;;  %5605 = vmatprep.subr.bf16.mxu0 %v5604_v37 }
 0x2e3   : > { %5599 = vmatpush3.bf16.msra.mxu1 %v5596_v52  ;;  %5607 = vmatpush3.bf16.msra.mxu0 %v5604_v37 }
 0x2e4   : > { %5601 = vmatprep.subr.bf16.mxu1 %v6670_v30 }
 0x38c   : > { %v5402_v22 = vpop.f32.mrb[4].mxu1  ;;  %v5409_v17 = vpop.f32.mrb[0].mxu0 }
 0x38d   : > { %v6673_v45 = vpop.f32.mrb[5].mxu1  ;;  %v6675_v23 = vpop.f32.mrb[1].mxu0  ;;  %v3103_v29 = vsel %vm3093_vm5, %v5409_v17, -inf  ;;  %v3097_v31 = vsel %vm3093_vm5, %v5402_v22, -inf }
 0x38e   : > { %3104 = vmax.xlane.f32.xlu0 %v3103_v29  ;;  %3098 = vmax.xlane.f32.xlu1 %v3097_v31  ;;  %v3094_v41 = vsel %vm3093_vm5, %v6673_v45, -inf  ;;  %v3100_v61 = vsel %vm3093_vm5, %v6675_v23, -inf }
 0x392   : > { %3095 = vmax.xlane.f32.xlu0 %v3094_v41 }
 0x396   : > { %3101 = vmax.xlane.f32.xlu0 %v3100_v61 }
 0x39a   : > { %v6683_v54 = vpop.f32.mrb[6].mxu1  ;;  %v6685_v14 = vpop.f32.mrb[2].mxu0 }
 0x39b   : > { %v6687_v36 = vpop.f32.mrb[7].mxu1  ;;  %v6689_v62 = vpop.f32.mrb[3].mxu0  ;;  %v3109_v13 = vsel %vm3093_vm5, %v6683_v54, -inf  ;;  %v3115_v18 = vsel %vm3093_vm5, %v6685_v14, -inf }
 0x39c   : > { %3110 = vmax.xlane.f32.xlu1 %v3109_v13  ;;  %3116 = vmax.xlane.f32.xlu0 %v3115_v18  ;;  %v3106_v24 = vsel %vm3093_vm5, %v6687_v36, -inf  ;;  %v3112_v25 = vsel %vm3093_vm5, %v6689_v62, -inf }
 0x3a0   : > { %3107 = vmax.xlane.f32.xlu1 %v3106_v24  ;;  %3113 = vmax.xlane.f32.xlu0 %v3112_v25 }
 0x3a3   : > { %v6699_v49 = vpop.f32.mrb[8].mxu1  ;;  %v6701_v19 = vpop.f32.mrb[4].mxu0 }
 0x3a4   : > { %v6703_v53 = vpop.f32.mrb[9].mxu1  ;;  %v6705_v38 = vpop.f32.mrb[5].mxu0  ;;  %v3121_v46 = vsel %vm3093_vm5, %v6699_v49, -inf  ;;  %v3127_v50 = vsel %vm3093_vm5, %v6701_v19, -inf }
 0x3a5   : > { %3122 = vmax.xlane.f32.xlu1 %v3121_v46  ;;  %3128 = vmax.xlane.f32.xlu0 %v3127_v50  ;;  %v3118_v47 = vsel %vm3093_vm5, %v6703_v53, -inf  ;;  %v3124_v33 = vsel %vm3093_vm5, %v6705_v38, -inf }
 0x3a9   : > { %3119 = vmax.xlane.f32.xlu1 %v3118_v47  ;;  %3125 = vmax.xlane.f32.xlu0 %v3124_v33 }
 0x3ab   : > { %v6715_v8 = vpop.f32.mrb[10].mxu1  ;;  %v6717_v9 = vpop.f32.mrb[6].mxu0 }
 0x3ac   : > { %v6719_v20 = vpop.f32.mrb[11].mxu1  ;;  %v6721_v51 = vpop.f32.mrb[7].mxu0  ;;  %v3133_v10 = vsel %vm3093_vm5, %v6715_v8, -inf  ;;  %v3139_v44 = vsel %vm3093_vm5, %v6717_v9, -inf }
 0x3ad   : > { %3134 = vmax.xlane.f32.xlu1 %v3133_v10  ;;  %3140 = vmax.xlane.f32.xlu0 %v3139_v44  ;;  %v3130_v56 = vsel %vm3093_vm5, %v6719_v20, -inf  ;;  %v3136_v57 = vsel %vm3093_vm5, %v6721_v51, -inf }
 0x3b1   : > { %3131 = vmax.xlane.f32.xlu1 %v3130_v56 }
 0x3c2   : > { %720 = vrot.lane.b32.xlu1 %v6167_v35, %s5942_s28 }
 0x3c3   : > { %722 = vrot.lane.b32.xlu0 %v6176_v40, %s5942_s28 }
 0x3c6   : > { %732 = vrot.lane.b32.xlu1 %v6167_v35, %s5944_s19 }
 0x3c7   : > { %744 = vrot.lane.b32.xlu0 %v6167_v35, %s5941_s27 }
 0x3ca   : > { %734 = vrot.lane.b32.xlu1 %v6176_v40, %s5944_s19 }
 0x3ce   : > { %746 = vrot.lane.b32.xlu1 %v6176_v40, %s5941_s27 }
 0x3d2   : > { %758 = vrot.lane.b32.xlu1 %v6176_v40, %s5943_s21 }
 0x3e6   : > { %3137 = vmax.xlane.f32.xlu0 %v3136_v57 }
 0x3fc   : > { %756 = vrot.lane.b32.xlu0 %v6167_v35, %s5943_s21 }
 0x41b   : > { %v3099_v58 = vpop.xlane.xlu1 %3098  ;;  %v3105_v55 = vpop.xlane.xlu0 %3104 }
 0x41c   : > { %v3143_v26 = vsub.f32 %v5402_v22, %v3099_v58  ;;  %v3145_v1 = vsub.f32 %v5409_v17, %v3105_v55 }
 0x41e   : > { %v3160_v16 = vmul.f32 1.442695, %v3143_v26  ;;  %v3164_v28 = vmul.f32 1.442695, %v3145_v1 }
 0x41f   : > { %v3096_v2 = vpop.xlane.xlu0 %3095 }
 0x420   : > { %5737 = vpow2.f32 %v3160_v16  ;;  %v3142_v6 = vsub.f32 %v6673_v45, %v3096_v2 }
 0x421   : > { %5739 = vpow2.f32 %v3164_v28 }
 0x422   : > { %v3158_v7 = vmul.f32 1.442695, %v3142_v6 }
 0x423   : > { %v3102_v40 = vpop.xlane.xlu0 %3101 }
 0x424   : > { %5741 = vpow2.f32 %v3158_v7  ;;  %v3144_v27 = vsub.f32 %v6675_v23, %v3102_v40 }
 0x426   : > { %v3162_v0 = vmul.f32 1.442695, %v3144_v27 }
 0x428   : > { %5743 = vpow2.f32 %v3162_v0 }
 0x429   : > { %v3111_v48 = vpop.xlane.xlu1 %3110  ;;  %v3117_v35 = vpop.xlane.xlu0 %3116 }
 0x42a   : > { %v6749_v11 = vpop.eup %5737  ;;  %v3147_v32 = vsub.f32 %v6683_v54, %v3111_v48  ;;  %v3149_v4 = vsub.f32 %v6685_v14, %v3117_v35 }
 0x42b   : > { %v6753_v3 = vpop.eup %5739  ;;  %v3193_v60 = vsel %vm3093_vm5, %v6749_v11, 0.0 }
 0x42c   : > { %v3168_v34 = vmul.f32 1.442695, %v3147_v32  ;;  %v3172_v42 = vmul.f32 1.442695, %v3149_v4  ;;  %3194 = vadd.xlane.f32.xlu0 %v3193_v60  ;;  %v3199_v5 = vsel %vm3093_vm5, %v6753_v3, 0.0 }
 0x42d   : > { %v3108_v12 = vpop.xlane.xlu1 %3107  ;;  %v3114_v39 = vpop.xlane.xlu0 %3113  ;;  %3200 = vadd.xlane.f32.xlu1 %v3199_v5 }
 0x42e   : > { %v6759_v43 = vpop.eup %5741  ;;  %5745 = vpow2.f32 %v3168_v34  ;;  %v3146_v52 = vsub.f32 %v6687_v36, %v3108_v12  ;;  %v3148_v37 = vsub.f32 %v6689_v62, %v3114_v39 }
 0x42f   : > { %5747 = vpow2.f32 %v3172_v42  ;;  %v3190_v15 = vsel %vm3093_vm5, %v6759_v43, 0.0 }
 0x430   : > { %v3166_v22 = vmul.f32 1.442695, %v3146_v52  ;;  %v3170_v17 = vmul.f32 1.442695, %v3148_v37 }
 0x431   : > { %3191 = vadd.xlane.f32.xlu1 %v3190_v15 }
 0x432   : > { %v6765_v45 = vpop.eup %5743  ;;  %5749 = vpow2.f32 %v3166_v22  ;;  %v3123_v23 = vpop.xlane.xlu1 %3122 }
 0x433   : > { %v3129_v29 = vpop.xlane.xlu0 %3128  ;;  %v3151_v31 = vsub.f32 %v6699_v49, %v3123_v23  ;;  %v3196_v61 = vsel %vm3093_vm5, %v6765_v45, 0.0  ;;  %5751 = vpow2.f32 %v3170_v17 }
 0x434   : > { %v3153_v41 = vsub.f32 %v6701_v19, %v3129_v29  ;;  %3197 = vadd.xlane.f32.xlu0 %v3196_v61 }
 0x435   : > { %v3176_v54 = vmul.f32 1.442695, %v3151_v31 }
 0x436   : > { %v3180_v14 = vmul.f32 1.442695, %v3153_v41  ;;  %v3120_v36 = vpop.xlane.xlu1 %3119 }
 0x437   : > { %v3126_v62 = vpop.xlane.xlu0 %3125  ;;  %5753 = vpow2.f32 %v3176_v54  ;;  %v3150_v13 = vsub.f32 %v6703_v53, %v3120_v36 }
 0x438   : > { %v3152_v18 = vsub.f32 %v6705_v38, %v3126_v62  ;;  %v6773_v24 = vpop.eup %5745  ;;  %5755 = vpow2.f32 %v3180_v14 }
 0x439   : > { %v6775_v25 = vpop.eup %5747  ;;  %v3174_v49 = vmul.f32 1.442695, %v3150_v13  ;;  %v3205_v46 = vsel %vm3093_vm5, %v6773_v24, 0.0 }
 0x43a   : > { %v3178_v19 = vmul.f32 1.442695, %v3152_v18  ;;  %v3135_v50 = vpop.xlane.xlu1 %3134  ;;  %3206 = vadd.xlane.f32.xlu1 %v3205_v46  ;;  %v3211_v47 = vsel %vm3093_vm5, %v6775_v25, 0.0 }
 0x43b   : > { %5757 = vpow2.f32 %v3174_v49  ;;  %3212 = vadd.xlane.f32.xlu0 %v3211_v47  ;;  %v3155_v38 = vsub.f32 %v6715_v8, %v3135_v50  ;;  %v3141_v10 = vpop.xlane.xlu0 %3140 }
 0x43c   : > { %v6781_v53 = vpop.eup %5749  ;;  %5759 = vpow2.f32 %v3178_v19  ;;  %v3157_v1 = vsub.f32 %v6717_v9, %v3141_v10 }
 0x43d   : > { %v3202_v44 = vsel %vm3093_vm5, %v6781_v53, 0.0  ;;  %v6786_v56 = vpop.eup %5751  ;;  %v3184_v55 = vmul.f32 1.442695, %v3155_v38 }
 0x43e   : > { %v3132_v33 = vpop.xlane.xlu1 %3131  ;;  %v3208_v28 = vsel %vm3093_vm5, %v6786_v56, 0.0  ;;  %v3188_v6 = vmul.f32 1.442695, %v3157_v1 }
 0x43f   : > { %v3154_v57 = vsub.f32 %v6719_v20, %v3132_v33  ;;  %3203 = vadd.xlane.f32.xlu0 %v3202_v44  ;;  %v723_v34 = vpop.permute.xlu0 %722 }
 0x441   : > { %v6789_v58 = vpop.eup %5753  ;;  %v3182_v26 = vmul.f32 1.442695, %v3154_v57 }
 0x442   : > { %v6792_v16 = vpop.permute.xlu1 %720  ;;  %v3217_v8 = vsel %vm3093_vm5, %v6789_v58, 0.0  ;;  %v6798_v2 = vpop.eup %5755 }
 0x443   : > { %5761 = vpow2.f32 %v3182_v26  ;;  %3218 = vadd.xlane.f32.xlu1 %v3217_v8  ;;  %3209 = vadd.xlane.f32.xlu0 %v3208_v28  ;;  %v3223_v40 = vsel %vm3093_vm5, %v6798_v2, 0.0 }
 0x444   : > { %5763 = vpow2.f32 %v3184_v55 }
 0x445   : > { %v6800_v20 = vpop.eup %5757  ;;  %5765 = vpow2.f32 %v3188_v6 }
 0x446   : > { %v6802_v7 = vpop.permute.xlu1 %732  ;;  %v3214_v9 = vsel %vm3093_vm5, %v6800_v20, 0.0  ;;  %v6808_v27 = vpop.eup %5759 }
 0x447   : > { %3215 = vadd.xlane.f32.xlu1 %v3214_v9  ;;  %3224 = vadd.xlane.f32.xlu0 %v3223_v40  ;;  %v3220_v48 = vsel %vm3093_vm5, %v6808_v27, 0.0 }
 0x44a   : > { %v735_v0 = vpop.permute.xlu1 %734 }
 0x44b   : > { %3221 = vadd.xlane.f32.xlu0 %v3220_v48  ;;  %v745_v48 = vpop.permute.xlu0 %744 }
 0x44d   : > { %v6812_v35 = vpop.eup %5761 }
 0x44e   : > { %v747_v32 = vpop.permute.xlu1 %746  ;;  %v3226_v4 = vsel %vm3093_vm5, %v6812_v35, 0.0  ;;  %v6816_v60 = vpop.eup %5763 }
 0x44f   : > { %3227 = vadd.xlane.f32.xlu0 %v3226_v4  ;;  %v1512_v42 = vcombine.low %v723_v34, %v747_v32  ;;  %v1513_v5 = vcombine.high %v723_v34, %v747_v32  ;;  %v3229_v39 = vsel %vm3093_vm5, %v6816_v60, 0.0  ;;  %v6820_v52 = vpop.eup %5765  ;;  %v1308_v34 = vcombine.low %v6792_v16, %v745_v48 }
 0x450   : > { %v3235_v31 = vsel %vm3093_vm5, %v6820_v52, 0.0 }
 0x451   : > { %v1520_v22 = vrot.slane %v1512_v42, %v6227_v59  ;;  %v1527_v17 = vrot.slane %v1513_v5, %v6227_v59  ;;  %v1309_v42 = vcombine.high %v6792_v16, %v745_v48 }
 0x452   : > { %v759_v12 = vpop.permute.xlu1 %758 }
 0x453   : > { %v1528_v37 = vcombine.low %v735_v0, %v759_v12  ;;  %v1529_v15 = vcombine.high %v735_v0, %v759_v12  ;;  %3230 = vadd.xlane.f32.xlu0 %v3229_v39 }
 0x455   : > { %v1536_v23 = vrot.slane %v1528_v37, %v6227_v59  ;;  %v1543_v29 = vrot.slane %v1529_v15, %v6227_v59  ;;  %v1316_v15 = vrot.slane %v1308_v34, %v6227_v59 }
 0x457   : > { %v1544_v41 = vcombine.low %v1520_v22, %v1536_v23  ;;  %v1545_v61 = vcombine.high %v1520_v22, %v1536_v23  ;;  %v1560_v54 = vcombine.low %v1527_v17, %v1543_v29  ;;  %v1561_v14 = vcombine.high %v1527_v17, %v1543_v29  ;;  %3236 = vadd.xlane.f32.xlu0 %v3235_v31 }
 0x458   : > { %v1323_v22 = vrot.slane %v1309_v42, %v6227_v59 }
 0x459   : > { %v1552_v36 = vrot.slane %v1544_v41, %v6231_v63  ;;  %v1559_v62 = vrot.slane %v1545_v61, %v6231_v63  ;;  %v1568_v13 = vrot.slane %v1560_v54, %v6231_v63  ;;  %v1575_v18 = vrot.slane %v1561_v14, %v6231_v63 }
 0x45b   : > { %v2328_v49 = vcombine.low %v1552_v36, %v1559_v62  ;;  %v5188_v19 = vcombine.high %v1552_v36, %v1559_v62  ;;  %v2344_v46 = vcombine.low %v1568_v13, %v1575_v18  ;;  %v5189_v50 = vcombine.high %v1568_v13, %v1575_v18 }
 0x45d   : > { %v2335_v47 = vrot.slane %v2328_v49, %v6227_v59  ;;  %v2343_v38 = vrot.slane %v5188_v19, %v6227_v59  ;;  %v2351_v33 = vrot.slane %v2344_v46, %v6227_v59  ;;  %v2359_v10 = vrot.slane %v5189_v50, %v6227_v59 }
 0x45f   : > { %v2360_v44 = vcombine.low %v2335_v47, %v2343_v38  ;;  %v2376_v57 = vcombine.low %v2351_v33, %v2359_v10  ;;  %v2361_v55 = vcombine.high %v2335_v47, %v2343_v38  ;;  %v2377_v26 = vcombine.high %v2351_v33, %v2359_v10 }
 0x461   : > { %v2368_v1 = vrot.slane %v2360_v44, %v6231_v63  ;;  %v2384_v8 = vrot.slane %v2376_v57, %v6231_v63  ;;  %v2375_v28 = vrot.slane %v2361_v55, %v6231_v63  ;;  %v2391_v6 = vrot.slane %v2377_v26, %v6231_v63 }
 0x463   : > { %v2393_v9 = vcombine.high %v2368_v1, %v2384_v8  ;;  %v2394_v40 = vcombine.low %v2375_v28, %v2391_v6  ;;  %v2395_v0 = vcombine.high %v2375_v28, %v2391_v6  ;;  %v2392_v6 = vcombine.low %v2368_v1, %v2384_v8 }
 0x473   : > { %v3138_v32 = vpop.xlane.xlu0 %3137 }
 0x474   : > { %v3156_v4 = vsub.f32 %v6721_v51, %v3138_v32 }
 0x476   : > { %v3186_v5 = vmul.f32 1.442695, %v3156_v4 }
 0x477   : > { %v757_v12 = vpop.permute.xlu0 %756 }
 0x478   : > { %5767 = vpow2.f32 %v3186_v5  ;;  %v1324_v39 = vcombine.low %v6802_v7, %v757_v12  ;;  %v1325_v37 = vcombine.high %v6802_v7, %v757_v12 }
 0x47a   : > { %v1332_v17 = vrot.slane %v1324_v39, %v6227_v59  ;;  %v1339_v23 = vrot.slane %v1325_v37, %v6227_v59 }
 0x47c   : > { %v1340_v51 = vcombine.low %v1316_v15, %v1332_v17  ;;  %v1341_v29 = vcombine.high %v1316_v15, %v1332_v17  ;;  %v1356_v31 = vcombine.low %v1323_v22, %v1339_v23  ;;  %v1357_v41 = vcombine.high %v1323_v22, %v1339_v23 }
 0x47e   : > { %v1348_v16 = vrot.slane %v1340_v51, %v6231_v63  ;;  %v1355_v61 = vrot.slane %v1341_v29, %v6231_v63  ;;  %v1364_v54 = vrot.slane %v1356_v31, %v6231_v63  ;;  %v1371_v7 = vrot.slane %v1357_v41, %v6231_v63 }
 0x480   : > { %v2260_v14 = vcombine.low %v1348_v16, %v1355_v61  ;;  %v5186_v36 = vcombine.high %v1348_v16, %v1355_v61  ;;  %v2276_v62 = vcombine.low %v1364_v54, %v1371_v7  ;;  %v5187_v13 = vcombine.high %v1364_v54, %v1371_v7 }
 0x482   : > { %v6853_v18 = vpop.eup %5767  ;;  %v2267_v49 = vrot.slane %v2260_v14, %v6227_v59  ;;  %v2275_v19 = vrot.slane %v5186_v36, %v6227_v59  ;;  %v2283_v46 = vrot.slane %v2276_v62, %v6227_v59  ;;  %v2291_v50 = vrot.slane %v5187_v13, %v6227_v59 }
 0x483   : > { %v3232_v47 = vsel %vm3093_vm5, %v6853_v18, 0.0 }
 0x484   : > { %3233 = vadd.xlane.f32.xlu1 %v3232_v47  ;;  %v2292_v38 = vcombine.low %v2267_v49, %v2275_v19  ;;  %v2308_v33 = vcombine.low %v2283_v46, %v2291_v50  ;;  %v2293_v10 = vcombine.high %v2267_v49, %v2275_v19  ;;  %v2309_v44 = vcombine.high %v2283_v46, %v2291_v50 }
 0x486   : > { %v2300_v57 = vrot.slane %v2292_v38, %v6231_v63  ;;  %v2316_v55 = vrot.slane %v2308_v33, %v6231_v63  ;;  %v2307_v26 = vrot.slane %v2293_v10, %v6231_v63  ;;  %v2323_v28 = vrot.slane %v2309_v44, %v6231_v63 }
 0x488   : > { %v2324_v48 = vcombine.low %v2300_v57, %v2316_v55  ;;  %v2325_v32 = vcombine.high %v2300_v57, %v2316_v55  ;;  %v2326_v4 = vcombine.low %v2307_v26, %v2323_v28  ;;  %v2327_v34 = vcombine.high %v2307_v26, %v2323_v28 }
 0x48a   : > { %v5612_v42 = vpack.c.bf16 %v2392_v6, %v2324_v48  ;;  %v6865_v5 = vpack.c.bf16 %v2393_v9, %v2325_v32  ;;  %v6867_v12 = vpack.c.bf16 %v2394_v40, %v2326_v4  ;;  %v6869_v39 = vpack.c.bf16 %v2395_v0, %v2327_v34 }
 0x48c   : > { %5613 = vmatprep.subr.bf16.mxu0 %v5612_v42 }
 0x4b9   : > { %v3195_v15 = vpop.xlane.xlu0 %3194 }
 0x4ba   : > { %v3201_v37 = vpop.xlane.xlu1 %3200  ;;  %5769 = vrcp.f32 %v3195_v15 }
 0x4be   : > { %v3192_v22 = vpop.xlane.xlu1 %3191 }
 0x4bf   : > { %5771 = vrcp.f32 %v3192_v22 }
 0x4c0   : > { %5773 = vrcp.f32 %v3201_v37 }
 0x4c1   : > { %v3198_v17 = vpop.xlane.xlu0 %3197 }
 0x4c2   : > { %5775 = vrcp.f32 %v3198_v17 }
 0x4c4   : > { %v5770_v1 = vpop.eup %5769 }
 0x4c5   : > { %v3255_v40 = vmul.f32 %v5770_v1, %v6749_v11 }
 0x4c7   : > { %v3207_v51 = vpop.xlane.xlu1 %3206 }
 0x4c8   : > { %v3213_v8 = vpop.xlane.xlu0 %3212  ;;  %5777 = vrcp.f32 %v3207_v51 }
 0x4c9   : > { %v5772_v23 = vpop.eup %5771 }
 0x4ca   : > { %v3254_v9 = vmul.f32 %v5772_v23, %v6759_v43  ;;  %v5774_v29 = vpop.eup %5773 }
 0x4cb   : > { %v3257_v16 = vmul.f32 %v5774_v29, %v6753_v3 }
 0x4cc   : > { %v5776_v0 = vpop.eup %5775  ;;  %v3204_v31 = vpop.xlane.xlu0 %3203  ;;  %5456 = vmatprep.mubr.msk.f32.mxu1 %vm3093_vm5, %v3254_v9 }
 0x4cd   : > { %5779 = vrcp.f32 %v3204_v31  ;;  %5457 = vmatmul.mubr.msk.f32.vlgmr.msra.gmra.mrb[12].mxu1 %vm3093_vm5, %v3255_v40  ;;  %v3256_v41 = vmul.f32 %v5776_v0, %v6765_v45 }
 0x4ce   : > { %5603 = vmatpush3.bf16.msra.mxu1 %v6670_v30  ;;  %5781 = vrcp.f32 %v3213_v8 }
 0x4cf   : > { %5609 = vmatprep.subr.bf16.mxu1 %v6668_v21  ;;  %5463 = vmatprep.mubr.msk.f32.mxu1 %vm3093_vm5, %v3256_v41 }
 0x4d0   : > { %v3219_v43 = vpop.xlane.xlu1 %3218  ;;  %v3210_v11 = vpop.xlane.xlu0 %3209 }
 0x4d1   : > { %5464 = vmatmul.mubr.msk.f32.vlgmr.msra.gmra.mrb[14].mxu1 %vm3093_vm5, %v3257_v16  ;;  %5783 = vrcp.f32 %v3210_v11 }
 0x4d2   : > { %5611 = vmatpush3.bf16.msra.mxu1 %v6668_v21  ;;  %5785 = vrcp.f32 %v3219_v43  ;;  %v5778_v30 = vpop.eup %5777 }
 0x4d3   : > { %5617 = vmatprep.subr.bf16.mxu1 %v6865_v5  ;;  %v3259_v14 = vmul.f32 %v5778_v30, %v6773_v24 }
 0x4d4   : > { %v3216_v45 = vpop.xlane.xlu1 %3215  ;;  %v3225_v61 = vpop.xlane.xlu0 %3224 }
 0x4d5   : > { %5787 = vrcp.f32 %v3216_v45 }
 0x4d6   : > { %5789 = vrcp.f32 %v3225_v61 }
 0x4d7   : > { %v5780_v3 = vpop.eup %5779 }
 0x4d8   : > { %v3222_v54 = vpop.xlane.xlu0 %3221  ;;  %v3258_v7 = vmul.f32 %v5780_v3, %v6781_v53  ;;  %v5782_v36 = vpop.eup %5781 }
 0x4d9   : > { %5791 = vrcp.f32 %v3222_v54  ;;  %v3261_v19 = vmul.f32 %v5782_v36, %v6775_v25 }
 0x4da   : > { %5470 = vmatprep.mubr.msk.f32.mxu0 %vm3093_vm5, %v3258_v7 }
 0x4db   : > { %5471 = vmatmul.mubr.msk.f32.vlgmr.msra.gmra.mrb[8].mxu0 %vm3093_vm5, %v3259_v14  ;;  %v5784_v21 = vpop.eup %5783 }
 0x4dc   : > { %5615 = vmatpush3.bf16.msra.mxu0 %v5612_v42  ;;  %v3228_v62 = vpop.xlane.xlu0 %3227  ;;  %v3260_v13 = vmul.f32 %v5784_v21, %v6786_v56  ;;  %v5786_v49 = vpop.eup %5785 }
 0x4dd   : > { %5621 = vmatprep.subr.bf16.mxu0 %v6867_v12  ;;  %5793 = vrcp.f32 %v3228_v62  ;;  %v3263_v50 = vmul.f32 %v5786_v49, %v6789_v58 }
 0x4de   : > { %5477 = vmatprep.mubr.msk.f32.mxu1 %vm3093_vm5, %v3260_v13 }
 0x4df   : > { %v5788_v53 = vpop.eup %5787  ;;  %5478 = vmatmul.mubr.msk.f32.vlgmr.msra.gmra.mrb[16].mxu1 %vm3093_vm5, %v3261_v19 }
 0x4e0   : > { %v3262_v24 = vmul.f32 %v5788_v53, %v6800_v20  ;;  %v3231_v46 = vpop.xlane.xlu0 %3230  ;;  %5619 = vmatpush3.bf16.msra.mxu1 %v6865_v5  ;;  %v5790_v47 = vpop.eup %5789 }
 0x4e1   : > { %5795 = vrcp.f32 %v3231_v46  ;;  %5625 = vmatprep.subr.bf16.mxu1 %v6869_v39  ;;  %v3265_v20 = vmul.f32 %v5790_v47, %v6798_v2 }
 0x4e2   : > { %5484 = vmatprep.mubr.msk.f32.mxu0 %vm3093_vm5, %v3262_v24 }
 0x4e3   : > { %v5792_v56 = vpop.eup %5791  ;;  %5485 = vmatmul.mubr.msk.f32.vlgmr.msra.gmra.mrb[10].mxu0 %vm3093_vm5, %v3263_v50 }
 0x4e4   : > { %5623 = vmatpush3.bf16.msra.mxu0 %v6867_v12  ;;  %v3264_v25 = vmul.f32 %v5792_v56, %v6808_v27  ;;  %v3237_v44 = vpop.xlane.xlu0 %3236 }
 0x4e5   : > { %5797 = vrcp.f32 %v3237_v44 }
 0x4e6   : > { %5491 = vmatprep.mubr.msk.f32.mxu1 %vm3093_vm5, %v3264_v25 }
 0x4e7   : > { %v5794_v58 = vpop.eup %5793  ;;  %5492 = vmatmul.mubr.msk.f32.vlgmr.msra.gmra.mrb[18].mxu1 %vm3093_vm5, %v3265_v20 }
 0x4e8   : > { %5627 = vmatpush3.bf16.msra.mxu1 %v6869_v39  ;;  %v3266_v38 = vmul.f32 %v5794_v58, %v6812_v35 }
 0x4ea   : > { %5498 = vmatprep.mubr.msk.f32.mxu0 %vm3093_vm5, %v3266_v38 }
 0x4eb   : > { %v5796_v33 = vpop.eup %5795 }
 0x4ec   : > { %v3267_v10 = vmul.f32 %v5796_v33, %v6816_v60 }
 0x4ee   : > { %5499 = vmatmul.mubr.msk.f32.vlgmr.msra.gmra.mrb[12].mxu0 %vm3093_vm5, %v3267_v10 }
 0x4ef   : > { %v5798_v2 = vpop.eup %5797 }
 0x4f0   : > { %v3269_v26 = vmul.f32 %v5798_v2, %v6820_v52 }
 0x511   : > { %v3234_v27 = vpop.xlane.xlu1 %3233 }
 0x512   : > { %5799 = vrcp.f32 %v3234_v27 }
 0x51c   : > { %v5800_v57 = vpop.eup %5799 }
 0x51d   : > { %v3268_v55 = vmul.f32 %v5800_v57, %v6853_v18 }
 0x51f   : > { %5505 = vmatprep.mubr.msk.f32.mxu1 %vm3093_vm5, %v3268_v55 }
 0x520   : > { %5506 = vmatmul.mubr.msk.f32.vlgmr.msra.gmra.mrb[20].mxu1 %vm3093_vm5, %v3269_v26 }
 0x5a0   : > { %v5458_v35 = vpop.f32.mrb[12].mxu1 }
 0x5a1   : > { %v3342_v28 = vpop.f32.mrb[13].mxu1 }
 0x5a4   : > { %v5465_v6 = vpop.f32.mrb[14].mxu1 }
 0x5a5   : > { %v3423_v60 = vpop.f32.mrb[15].mxu1 }
 0x5ae   : > { %v5472_v48 = vpop.f32.mrb[8].mxu0 }
 0x5af   : > { %v3986_v32 = vcombine.low %v5458_v35, %v5472_v48  ;;  %v3987_v4 = vcombine.high %v5458_v35, %v5472_v48  ;;  %v3504_v34 = vpop.f32.mrb[9].mxu0 }
 0x5b0   : > { %v3918_v42 = vcombine.low %v3342_v28, %v3504_v34  ;;  %v3919_v5 = vcombine.high %v3342_v28, %v3504_v34 }
 0x5b1   : > { %v3994_v22 = vrot.slane %v3986_v32, %v6227_v59  ;;  %v4001_v17 = vrot.slane %v3987_v4, %v6227_v59 }
 0x5b2   : > { %v5479_v12 = vpop.f32.mrb[16].mxu1  ;;  %v3926_v51 = vrot.slane %v3918_v42, %v6227_v59  ;;  %v3933_v9 = vrot.slane %v3919_v5, %v6227_v59 }
 0x5b3   : > { %v4002_v39 = vcombine.low %v5465_v6, %v5479_v12  ;;  %v4003_v37 = vcombine.high %v5465_v6, %v5479_v12  ;;  %v3585_v18 = vpop.f32.mrb[17].mxu1 }
 0x5b4   : > { %v3934_v15 = vcombine.low %v3423_v60, %v3585_v18  ;;  %v3935_v52 = vcombine.high %v3423_v60, %v3585_v18 }
 0x5b5   : > { %v4010_v1 = vrot.slane %v4002_v39, %v6227_v59  ;;  %v4017_v8 = vrot.slane %v4003_v37, %v6227_v59 }
 0x5b6   : > { %v6916_v23 = vpop.f32.mrb[10].mxu0  ;;  %v3942_v29 = vrot.slane %v3934_v15, %v6227_v59  ;;  %v3949_v40 = vrot.slane %v3935_v52, %v6227_v59 }
 0x5b7   : > { %v6922_v0 = vpop.f32.mrb[11].mxu0  ;;  %v4018_v31 = vcombine.low %v3994_v22, %v4010_v1  ;;  %v4019_v41 = vcombine.high %v3994_v22, %v4010_v1  ;;  %v4034_v16 = vcombine.low %v4001_v17, %v4017_v8  ;;  %v4035_v43 = vcombine.high %v4001_v17, %v4017_v8 }
 0x5b8   : > { %v3950_v11 = vcombine.low %v3926_v51, %v3942_v29  ;;  %v3951_v45 = vcombine.high %v3926_v51, %v3942_v29  ;;  %v3966_v61 = vcombine.low %v3933_v9, %v3949_v40  ;;  %v3967_v30 = vcombine.high %v3933_v9, %v3949_v40 }
 0x5b9   : > { %v4026_v3 = vrot.slane %v4018_v31, %v6231_v63  ;;  %v4033_v54 = vrot.slane %v4019_v41, %v6231_v63  ;;  %v4042_v7 = vrot.slane %v4034_v16, %v6231_v63  ;;  %v4049_v14 = vrot.slane %v4035_v43, %v6231_v63 }
 0x5ba   : > { %v6928_v36 = vpop.f32.mrb[18].mxu1  ;;  %v3958_v21 = vrot.slane %v3950_v11, %v6231_v63  ;;  %v3965_v62 = vrot.slane %v3951_v45, %v6231_v63  ;;  %v3974_v13 = vrot.slane %v3966_v61, %v6231_v63  ;;  %v3981_v49 = vrot.slane %v3967_v30, %v6231_v63 }
 0x5bb   : > { %v6934_v19 = vpop.f32.mrb[19].mxu1  ;;  %v4258_v53 = vcombine.low %v4026_v3, %v4033_v54  ;;  %v5240_v24 = vcombine.high %v4026_v3, %v4033_v54  ;;  %v4274_v46 = vcombine.low %v4042_v7, %v4049_v14  ;;  %v5241_v50 = vcombine.high %v4042_v7, %v4049_v14 }
 0x5bc   : > { %v4190_v47 = vcombine.low %v3958_v21, %v3965_v62  ;;  %v5238_v56 = vcombine.high %v3958_v21, %v3965_v62  ;;  %v4206_v25 = vcombine.low %v3974_v13, %v3981_v49  ;;  %v5239_v20 = vcombine.high %v3974_v13, %v3981_v49 }
 0x5bd   : > { %v4265_v58 = vrot.slane %v4258_v53, %v6227_v59  ;;  %v4273_v38 = vrot.slane %v5240_v24, %v6227_v59  ;;  %v4281_v33 = vrot.slane %v4274_v46, %v6227_v59  ;;  %v4289_v10 = vrot.slane %v5241_v50, %v6227_v59 }
 0x5be   : > { %v4197_v44 = vrot.slane %v4190_v47, %v6227_v59  ;;  %v4205_v27 = vrot.slane %v5238_v56, %v6227_v59  ;;  %v4213_v2 = vrot.slane %v4206_v25, %v6227_v59  ;;  %v4221_v57 = vrot.slane %v5239_v20, %v6227_v59 }
 0x5bf   : > { %v4290_v55 = vcombine.low %v4265_v58, %v4273_v38  ;;  %v4306_v26 = vcombine.low %v4281_v33, %v4289_v10  ;;  %v4291_v35 = vcombine.high %v4265_v58, %v4273_v38  ;;  %v4307_v28 = vcombine.high %v4281_v33, %v4289_v10 }
 0x5c0   : > { %v4222_v60 = vcombine.low %v4197_v44, %v4205_v27  ;;  %v4238_v48 = vcombine.low %v4213_v2, %v4221_v57  ;;  %v4223_v32 = vcombine.high %v4197_v44, %v4205_v27  ;;  %v4239_v4 = vcombine.high %v4213_v2, %v4221_v57 }
 0x5c1   : > { %v5500_v6 = vpop.f32.mrb[12].mxu0  ;;  %v6947_v12 = vrot.slane %v4290_v55, %v6231_v63  ;;  %v6950_v39 = vrot.slane %v4306_v26, %v6231_v63  ;;  %v4305_v9 = vrot.slane %v4291_v35, %v6231_v63  ;;  %v4321_v29 = vrot.slane %v4307_v28, %v6231_v63 }
 0x5c2   : > { %v4122_v34 = vcombine.low %v6916_v23, %v5500_v6  ;;  %v4123_v42 = vcombine.high %v6916_v23, %v5500_v6  ;;  %v3828_v5 = vpop.f32.mrb[13].mxu0  ;;  %v6955_v15 = vrot.slane %v4222_v60, %v6231_v63  ;;  %v6958_v52 = vrot.slane %v4238_v48, %v6231_v63 }
 0x5c3   : > { %v4054_v37 = vcombine.low %v6922_v0, %v3828_v5  ;;  %v4055_v18 = vcombine.high %v6922_v0, %v3828_v5  ;;  %v4322_v22 = vcombine.low %v6947_v12, %v6950_v39  ;;  %v4323_v17 = vcombine.high %v6947_v12, %v6950_v39 }
 0x5c4   : > { %v4255_v1 = vcombine.high %v6955_v15, %v6958_v52  ;;  %v4254_v8 = vcombine.low %v6955_v15, %v6958_v52  ;;  %v4237_v23 = vrot.slane %v4223_v32, %v6231_v63  ;;  %v4253_v51 = vrot.slane %v4239_v4, %v6231_v63 }
 0x5c5   : > { %v4324_v31 = vcombine.low %v4305_v9, %v4321_v29  ;;  %v4325_v16 = vcombine.high %v4305_v9, %v4321_v29  ;;  %v4130_v14 = vrot.slane %v4122_v34, %v6227_v59  ;;  %v4137_v21 = vrot.slane %v4123_v42, %v6227_v59 }
 0x5c6   : > { %v5697_v40 = vpack.i.bf16 %v4323_v17, %v4255_v1  ;;  %v4256_v0 = vcombine.low %v4237_v23, %v4253_v51  ;;  %v4257_v41 = vcombine.high %v4237_v23, %v4253_v51  ;;  %v4062_v49 = vrot.slane %v4054_v37, %v6227_v59 }
 0x5c7   : > { %v4069_v53 = vrot.slane %v4055_v18, %v6227_v59  ;;  %v5729_v18 = vld [vmem:[%s6103_s22] sm:$0xff]  }
 0x5c8   : > { %5698 = vrot.lane.b32.xlu1 %v5697_v40, %s5947_s23  ;;  %v5702_v43 = vpack.i.bf16 %v4324_v31, %v4256_v0  ;;  %v6973_v11 = vpack.i.bf16 %v4325_v16, %v4257_v41  ;;  %5508 = vmatprep.subr.bf16.mxu0 %v5729_v18 }
 0x5c9   : > { %5509 = vmatpush3.bf16.msra.mxu0 %v5729_v18 }
 0x5cc   : > { %5703 = vrot.lane.b32.xlu1 %v5702_v43, %s5948_s20 }
 0x5f3   : > { %v5507_v45 = vpop.f32.mrb[20].mxu1 }
 0x5f4   : > { %v4138_v61 = vcombine.low %v6928_v36, %v5507_v45  ;;  %v4139_v30 = vcombine.high %v6928_v36, %v5507_v45  ;;  %v3909_v3 = vpop.f32.mrb[21].mxu1 }
 0x5f5   : > { %v4070_v54 = vcombine.low %v6934_v19, %v3909_v3  ;;  %v4071_v7 = vcombine.high %v6934_v19, %v3909_v3 }
 0x5f6   : > { %v4146_v62 = vrot.slane %v4138_v61, %v6227_v59  ;;  %v4153_v13 = vrot.slane %v4139_v30, %v6227_v59 }
 0x5f7   : > { %v4078_v24 = vrot.slane %v4070_v54, %v6227_v59  ;;  %v4085_v36 = vrot.slane %v4071_v7, %v6227_v59 }
 0x5f8   : > { %v4154_v46 = vcombine.low %v4130_v14, %v4146_v62  ;;  %v4155_v50 = vcombine.high %v4130_v14, %v4146_v62  ;;  %v4170_v47 = vcombine.low %v4137_v21, %v4153_v13  ;;  %v4171_v19 = vcombine.high %v4137_v21, %v4153_v13  ;;  %v5730_v21 = vld [vmem:[%s6103_s22 + $0x8] sm:$0xff]  }
 0x5f9   : > { %v4086_v56 = vcombine.low %v4062_v49, %v4078_v24  ;;  %v4087_v25 = vcombine.high %v4062_v49, %v4078_v24  ;;  %v4102_v20 = vcombine.low %v4069_v53, %v4085_v36  ;;  %v4103_v58 = vcombine.high %v4069_v53, %v4085_v36  ;;  %5510 = vmatprep.subr.bf16.mxu0 %v5730_v21 }
 0x5fa   : > { %v4162_v38 = vrot.slane %v4154_v46, %v6231_v63  ;;  %v4169_v33 = vrot.slane %v4155_v50, %v6231_v63  ;;  %v4178_v10 = vrot.slane %v4170_v47, %v6231_v63  ;;  %v4185_v44 = vrot.slane %v4171_v19, %v6231_v63  ;;  %5511 = vmatpush3.bf16.msra.mxu0 %v5730_v21 }
 0x5fb   : > { %v4094_v27 = vrot.slane %v4086_v56, %v6231_v63  ;;  %v4101_v2 = vrot.slane %v4087_v25, %v6231_v63  ;;  %v4110_v57 = vrot.slane %v4102_v20, %v6231_v63  ;;  %v4117_v55 = vrot.slane %v4103_v58, %v6231_v63 }
 0x5fc   : > { %v4394_v26 = vcombine.low %v4162_v38, %v4169_v33  ;;  %v5244_v35 = vcombine.high %v4162_v38, %v4169_v33  ;;  %v4410_v28 = vcombine.low %v4178_v10, %v4185_v44  ;;  %v5245_v6 = vcombine.high %v4178_v10, %v4185_v44 }
 0x5fd   : > { %v4326_v60 = vcombine.low %v4094_v27, %v4101_v2  ;;  %v5242_v48 = vcombine.high %v4094_v27, %v4101_v2  ;;  %v4342_v32 = vcombine.low %v4110_v57, %v4117_v55  ;;  %v5243_v4 = vcombine.high %v4110_v57, %v4117_v55 }
 0x5fe   : > { %v4401_v34 = vrot.slane %v4394_v26, %v6227_v59  ;;  %v4409_v42 = vrot.slane %v5244_v35, %v6227_v59  ;;  %v4417_v5 = vrot.slane %v4410_v28, %v6227_v59  ;;  %v4425_v37 = vrot.slane %v5245_v6, %v6227_v59 }
 0x5ff   : > { %v4333_v17 = vrot.slane %v4326_v60, %v6227_v59  ;;  %v4341_v1 = vrot.slane %v5242_v48, %v6227_v59  ;;  %v4349_v23 = vrot.slane %v4342_v32, %v6227_v59  ;;  %v4357_v51 = vrot.slane %v5243_v4, %v6227_v59 }
 0x600   : > { %v4427_v9 = vcombine.high %v4401_v34, %v4409_v42  ;;  %v4443_v29 = vcombine.high %v4417_v5, %v4425_v37  ;;  %v4426_v40 = vcombine.low %v4401_v34, %v4409_v42  ;;  %v4442_v0 = vcombine.low %v4417_v5, %v4425_v37 }
 0x601   : > { %v4359_v31 = vcombine.high %v4333_v17, %v4341_v1  ;;  %v4375_v41 = vcombine.high %v4349_v23, %v4357_v51  ;;  %v4358_v16 = vcombine.low %v4333_v17, %v4341_v1  ;;  %v4374_v43 = vcombine.low %v4349_v23, %v4357_v51  ;;  %v5246_v17 = vld [vmem:[%s6087_s16 + $0x1] ss:$0 sm:$0xff] }
 0x602   : > { %v4441_v45 = vrot.slane %v4427_v9, %v6231_v63  ;;  %v4457_v61 = vrot.slane %v4443_v29, %v6231_v63  ;;  %v4434_v30 = vrot.slane %v4426_v40, %v6231_v63  ;;  %v4450_v3 = vrot.slane %v4442_v0, %v6231_v63 }
 0x603   : > { %v4373_v59 = vrot.slane %v4359_v31, %v6231_v63  ;;  %v4389_v54 = vrot.slane %v4375_v41, %v6231_v63  ;;  %v4366_v7 = vrot.slane %v4358_v16, %v6231_v63  ;;  %v4382_v14 = vrot.slane %v4374_v43, %v6231_v63  ;;  %v5825_v31 = vld [vmem:[#allocation2] sm:$0xff] }
 0x604   : > { %v4460_v62 = vcombine.low %v4441_v45, %v4457_v61  ;;  %v4458_v13 = vcombine.low %v4434_v30, %v4450_v3  ;;  %v4459_v49 = vcombine.high %v4434_v30, %v4450_v3  ;;  %v4461_v53 = vcombine.high %v4441_v45, %v4457_v61  ;;  %v5826_v45 = vld [vmem:[#allocation2 + $0x8] sm:$0xff]  ;;  %v5827_v30 = vld [vmem:[#allocation2 + $0x10] sm:$0xff] }
 0x605   : > { %v4392_v24 = vcombine.low %v4373_v59, %v4389_v54  ;;  %v4391_v36 = vcombine.high %v4366_v7, %v4382_v14  ;;  %v4390_v46 = vcombine.low %v4366_v7, %v4382_v14  ;;  %v4393_v50 = vcombine.high %v4373_v59, %v4389_v54  ;;  %v5828_v7 = vld [vmem:[#allocation2 + $0x18] sm:$0xff] }
 0x607   : > { %v5717_v47 = vpack.i.bf16 %v4460_v62, %v4392_v24  ;;  %v5707_v19 = vpack.i.bf16 %v4459_v49, %v4391_v36  ;;  %v5722_v56 = vpack.i.bf16 %v4461_v53, %v4393_v50 }
 0x609   : > { %5718 = vrot.lane.b32.xlu1 %v5717_v47, %s5948_s20  ;;  %5708 = vrot.lane.b32.xlu0 %v5707_v19, %s5947_s23 }
 0x60d   : > { %5723 = vrot.lane.b32.xlu1 %v5722_v56, %s5949_s26  ;;  %5713 = vrot.lane.b32.xlu0 %v6973_v11, %s5949_s26 }
 0x63a   : > { %v5699_v63 = vpop.permute.xlu1 %5698 }
 0x63b   : > { %v5701_v20 = vunpack.i.h.bf16 %v5699_v63  ;;  %v5700_v58 = vunpack.i.l.bf16 %v5699_v63 }
 0x63d   : > { %v4511_v11 = vsel %vm2396_vm3, %v4322_v22, %v5701_v20  ;;  %v4510_v28 = vsel %vm2396_vm3, %v4254_v8, %v5700_v58 }
 0x63e   : > { %v5704_v25 = vpop.permute.xlu1 %5703 }
 0x63f   : > { %v5706_v27 = vunpack.i.h.bf16 %v5704_v25  ;;  %v5705_v2 = vunpack.i.l.bf16 %v5704_v25 }
 0x641   : > { %v4514_v42 = vsel %vm3093_vm5, %v4510_v28, %v5705_v2  ;;  %v4515_v5 = vsel %vm3093_vm5, %v4511_v11, %v5706_v27  ;;  %v5731_v2 = vld [vmem:[%s6108_s18] sm:$0xff]  }
 0x642   : > { %5516 = vmatprep.subr.bf16.mxu1 %v5731_v2 }
 0x643   : > { %5517 = vmatpush3.bf16.msra.mxu1 %v5731_v2 }
 0x67b   : > { %v5719_v38 = vpop.permute.xlu1 %5718  ;;  %v5709_v33 = vpop.permute.xlu0 %5708 }
 0x67c   : > { %v5711_v10 = vunpack.i.h.bf16 %v5709_v33  ;;  %v5710_v44 = vunpack.i.l.bf16 %v5709_v33  ;;  %v5721_v57 = vunpack.i.h.bf16 %v5719_v38  ;;  %v5720_v55 = vunpack.i.l.bf16 %v5719_v38 }
 0x67e   : > { %v4513_v26 = vsel %vm2396_vm3, %v4458_v13, %v5711_v10  ;;  %v4512_v35 = vsel %vm2396_vm3, %v4390_v46, %v5710_v44 }
 0x67f   : > { %v5724_v6 = vpop.permute.xlu1 %5723  ;;  %v5714_v60 = vpop.permute.xlu0 %5713  ;;  %v4516_v12 = vsel %vm3093_vm5, %v4512_v35, %v5720_v55  ;;  %v4517_v39 = vsel %vm3093_vm5, %v4513_v26, %v5721_v57  ;;  %v5732_v57 = vld [vmem:[%s6108_s18 + $0x8] sm:$0xff]  }
 0x680   : > { %v5726_v48 = vunpack.i.h.bf16 %v5724_v6  ;;  %v5725_v32 = vunpack.i.l.bf16 %v5724_v6  ;;  %v5716_v4 = vunpack.i.h.bf16 %v5714_v60  ;;  %v5715_v34 = vunpack.i.l.bf16 %v5714_v60  ;;  %5518 = vmatprep.subr.bf16.mxu1 %v5732_v57 }
 0x681   : > { %5519 = vmatpush3.bf16.msra.mxu1 %v5732_v57 }
 0x682   : > { %v4521_v22 = vsel %vm4518_vm6, %v4516_v12, %v5725_v32  ;;  %v4522_v15 = vsel %vm4518_vm6, %v4517_v39, %v5726_v48  ;;  %v4520_v52 = vsel %vm4518_vm6, %v4515_v5, %v5716_v4  ;;  %v4519_v8 = vsel %vm4518_vm6, %v4514_v42, %v5715_v34  ;;  %v5251_v12 = vld [vmem:[%s6087_s16 + $0x2] ss:$0 sm:$0xff] }
 0x683   : > { %v4524_v37 = vpack.c.bf16 %v4522_v15, %v4521_v22  ;;  %v4523_v18 = vpack.c.bf16 %v4520_v52, %v4519_v8 }
 0x685   : > { %5512 = vmatprep.mubr.msk.bf16.mxu0 %vm572_vm2, %v4523_v18 }
 0x686   : > { %5513 = vmatmul.mubr.msk.bf16.vlgmr.msra.gmra.mrb[16].mxu0 %vm572_vm2, %v4524_v37  ;;  %v5252_v37 = vld [vmem:[%s6087_s16 + $0x3] ss:$0 sm:$0xff] }
 0x759   : > { %v5514_v1 = vpop.f32.mrb[16].mxu0 }
 0x75a   : > { %v4585_v23 = vpop.f32.mrb[17].mxu0  ;;  %v4594_v51 = vadd.f32 %v5514_v1, %v5246_v17 }
 0x75b   : > { %v4586_v9 = vadd.f32 %v5246_v17, %v4585_v23  ;;  %v5515_v29 = vpop.f32.mrb[18].mxu0 }
 0x75c   : > { %v4588_v40 = vpop.f32.mrb[19].mxu0  ;;  %v4597_v16 = vadd.f32 %v5515_v29, %v5246_v17  ;;  %v4602_v3 = vadd.f32 %v5827_v30, %v4594_v51  ;;  %v5736_v30 = vld [vmem:[%s6113_s15 + $0x18] sm:$0xff]  }
 0x75d   : > { %v4589_v0 = vadd.f32 %v5246_v17, %v4588_v40  ;;  %v4600_v41 = vadd.f32 %v5825_v31, %v4586_v9 }
 0x75e   : > { %v4610_v54 = vsel %vm572_vm2, %v4602_v3, 0.0  ;;  %v4603_v14 = vadd.f32 %v5828_v7, %v4597_v16 }
 0x75f   : > { %v4604_v43 = vsel %vm572_vm2, %v4600_v41, 0.0  ;;  %v4601_v61 = vadd.f32 %v5826_v45, %v4589_v0  ;;  %v5734_v45 = vld [vmem:[%s6113_s15 + $0x8] sm:$0xff]  }
 0x760   : > { %4605 = vadd.xlane.f32.xlu0 %v4604_v43  ;;  %v4613_v21 = vsel %vm572_vm2, %v4603_v14, 0.0  ;;  %v5733_v43 = vld [vmem:[%s6113_s15] sm:$0xff]  }
 0x761   : > { %v4607_v59 = vsel %vm572_vm2, %v4601_v61, 0.0  ;;  %5524 = vmatprep.subr.bf16.mxu0 %v5733_v43 }
 0x762   : > { %4608 = vadd.xlane.f32.xlu1 %v4607_v59  ;;  %5525 = vmatpush3.bf16.msra.mxu0 %v5733_v43 }
 0x763   : > { %5526 = vmatprep.subr.bf16.mxu0 %v5734_v45 }
 0x764   : > { %4611 = vadd.xlane.f32.xlu0 %v4610_v54 }
 0x766   : > { %5527 = vmatpush3.bf16.msra.mxu0 %v5734_v45 }
 0x768   : > { %4614 = vadd.xlane.f32.xlu0 %v4613_v21 }
 0x7ed   : > { %v4606_v62 = vpop.xlane.xlu0 %4605 }
 0x7ee   : > { %v4617_v13 = vmul.f32 0.03125, %v4606_v62 }
 0x7ef   : > { %v4609_v49 = vpop.xlane.xlu1 %4608 }
 0x7f0   : > { %v4621_v53 = vsub.f32 %v4600_v41, %v4617_v13  ;;  %v4618_v24 = vmul.f32 0.03125, %v4609_v49 }
 0x7f1   : > { %v4612_v36 = vpop.xlane.xlu0 %4611 }
 0x7f2   : > { %v4622_v46 = vsub.f32 %v4601_v61, %v4618_v24  ;;  %v4619_v50 = vmul.f32 0.03125, %v4612_v36  ;;  %v4625_v47 = vmul.f32 %v4621_v53, %v4621_v53  ;;  %v5735_v61 = vld [vmem:[%s6113_s15 + $0x10] sm:$0xff]  }
 0x7f3   : > { %5528 = vmatprep.subr.bf16.mxu0 %v5735_v61 }
 0x7f4   : > { %v4623_v19 = vsub.f32 %v4602_v3, %v4619_v50  ;;  %v4629_v56 = vsel %vm572_vm2, %v4625_v47, 0.0  ;;  %v4626_v63 = vmul.f32 %v4622_v46, %v4622_v46  ;;  %5529 = vmatpush3.bf16.msra.mxu0 %v5735_v61  ;;  %v5253_v3 = vld [vmem:[%s6087_s16 + $0x4] ss:$0 sm:$0xff] }
 0x7f5   : > { %4630 = vadd.xlane.f32.xlu1 %v4629_v56  ;;  %v4615_v25 = vpop.xlane.xlu0 %4614  ;;  %5530 = vmatprep.subr.bf16.mxu0 %v5736_v30 }
 0x7f6   : > { %v4620_v20 = vmul.f32 0.03125, %v4615_v25  ;;  %v4632_v58 = vsel %vm572_vm2, %v4626_v63, 0.0  ;;  %v4627_v38 = vmul.f32 %v4623_v19, %v4623_v19 }
 0x7f7   : > { %4633 = vadd.xlane.f32.xlu0 %v4632_v58 }
 0x7f8   : > { %v4624_v33 = vsub.f32 %v4603_v14, %v4620_v20  ;;  %v4635_v10 = vsel %vm572_vm2, %v4627_v38, 0.0  ;;  %5531 = vmatpush3.bf16.msra.mxu0 %v5736_v30 }
 0x7f9   : > { %4636 = vadd.xlane.f32.xlu1 %v4635_v10 }
 0x7fa   : > { %v4628_v44 = vmul.f32 %v4624_v33, %v4624_v33 }
 0x7fc   : > { %v4638_v27 = vsel %vm572_vm2, %v4628_v44, 0.0 }
 0x7fd   : > { %4639 = vadd.xlane.f32.xlu0 %v4638_v27 }
 0x882   : > { %v4631_v55 = vpop.xlane.xlu1 %4630 }
 0x883   : > { %v4641_v26 = vmul.f32 0.03125, %v4631_v55 }
 0x884   : > { %v4634_v35 = vpop.xlane.xlu0 %4633 }
 0x885   : > { %v4645_v11 = vadd.f32 1e-05, %v4641_v26  ;;  %v4642_v28 = vmul.f32 0.03125, %v4634_v35 }
 0x886   : > { %v4637_v6 = vpop.xlane.xlu1 %4636 }
 0x887   : > { %5801 = vrsqrt.f32 %v4645_v11  ;;  %v4646_v60 = vadd.f32 1e-05, %v4642_v28  ;;  %v4643_v48 = vmul.f32 0.03125, %v4637_v6  ;;  %v5258_v11 = vld [vmem:[%s6087_s16 + $0x5] ss:$0 sm:$0xff] }
 0x889   : > { %5803 = vrsqrt.f32 %v4646_v60  ;;  %v4647_v32 = vadd.f32 1e-05, %v4643_v48 }
 0x88a   : > { %v4640_v4 = vpop.xlane.xlu0 %4639 }
 0x88b   : > { %5805 = vrsqrt.f32 %v4647_v32  ;;  %v4644_v34 = vmul.f32 0.03125, %v4640_v4 }
 0x88d   : > { %v4648_v42 = vadd.f32 1e-05, %v4644_v34 }
 0x88f   : > { %5807 = vrsqrt.f32 %v4648_v42 }
 0x891   : > { %v5802_v5 = vpop.eup %5801 }
 0x892   : > { %v4653_v39 = vmul.f32 %v5802_v5, %v4621_v53 }
 0x893   : > { %v5804_v22 = vpop.eup %5803 }
 0x894   : > { %v4654_v15 = vmul.f32 %v5804_v22, %v4622_v46  ;;  %v4661_v52 = vmul.f32 %v5251_v12, %v4653_v39 }
 0x895   : > { %v5806_v8 = vpop.eup %5805 }
 0x896   : > { %v4655_v18 = vmul.f32 %v5806_v8, %v4623_v19  ;;  %v4662_v17 = vmul.f32 %v5251_v12, %v4654_v15  ;;  %v7046_v1 = vadd.f32 %v5252_v37, %v4661_v52 }
 0x898   : > { %v7048_v23 = vadd.f32 %v5252_v37, %v4662_v17  ;;  %v4663_v9 = vmul.f32 %v5251_v12, %v4655_v18 }
 0x899   : > { %v5808_v51 = vpop.eup %5807 }
 0x89a   : > { %v4656_v29 = vmul.f32 %v5808_v51, %v4624_v33  ;;  %v4673_v40 = vpack.c.bf16 %v7048_v23, %v7046_v1  ;;  %v7053_v31 = vadd.f32 %v5252_v37, %v4663_v9 }
 0x89c   : > { %v4664_v0 = vmul.f32 %v5251_v12, %v4656_v29  ;;  %5520 = vmatprep.mubr.msk.bf16.mxu1 %vm572_vm2, %v4673_v40 }
 0x89e   : > { %v7055_v41 = vadd.f32 %v5252_v37, %v4664_v0 }
 0x8a0   : > { %v4674_v16 = vpack.c.bf16 %v7055_v41, %v7053_v31 }
 0x8a2   : > { %5521 = vmatmul.mubr.msk.bf16.vlgmr.msra.gmra.mrb[24].mxu1 %vm572_vm2, %v4674_v16 }
 0x975   : > { %v5522_v59 = vpop.f32.mrb[24].mxu1 }
 0x976   : > { %v4744_v54 = vadd.f32 %v5522_v59, %v5253_v3  ;;  %v4735_v7 = vpop.f32.mrb[25].mxu1 }
 0x977   : > { %v4736_v14 = vadd.f32 %v5253_v3, %v4735_v7  ;;  %v5523_v21 = vpop.f32.mrb[26].mxu1 }
 0x978   : > { %v4756_v62 = vmul.f32 0.70710677, %v4744_v54  ;;  %v4747_v13 = vadd.f32 %v5523_v21, %v5253_v3  ;;  %v4738_v49 = vpop.f32.mrb[27].mxu1  ;;  %v4752_v20 = vmul.f32 0.5, %v4744_v54 }
 0x979   : > { %v4754_v53 = vmul.f32 0.70710677, %v4736_v14  ;;  %v4739_v24 = vadd.f32 %v5253_v3, %v4738_v49  ;;  %v4750_v33 = vmul.f32 0.5, %v4736_v14 }
 0x97a   : > { %5809 = verf.f32 %v4756_v62  ;;  %v4757_v36 = vmul.f32 0.70710677, %v4747_v13  ;;  %v4753_v58 = vmul.f32 0.5, %v4747_v13 }
 0x97b   : > { %5811 = verf.f32 %v4754_v53  ;;  %v4755_v46 = vmul.f32 0.70710677, %v4739_v24  ;;  %v4751_v10 = vmul.f32 0.5, %v4739_v24 }
 0x97c   : > { %5813 = verf.f32 %v4757_v36 }
 0x97d   : > { %5815 = verf.f32 %v4755_v46 }
 0x984   : > { %v5810_v50 = vpop.eup %5809 }
 0x985   : > { %v5812_v47 = vpop.eup %5811  ;;  %v4764_v19 = vadd.f32 1.0, %v5810_v50 }
 0x986   : > { %v5814_v56 = vpop.eup %5813  ;;  %v4762_v63 = vadd.f32 1.0, %v5812_v47 }
 0x987   : > { %v5816_v25 = vpop.eup %5815  ;;  %v4765_v38 = vadd.f32 1.0, %v5814_v56  ;;  %v4768_v27 = vmul.f32 %v4764_v19, %v4752_v20 }
 0x988   : > { %v4763_v44 = vadd.f32 1.0, %v5816_v25  ;;  %v4766_v57 = vmul.f32 %v4762_v63, %v4750_v33  ;;  %v5265_v63 = vld [vmem:[%s6087_s16 + $0x6] ss:$0 sm:$0xff] }
 0x989   : > { %v4769_v2 = vmul.f32 %v4765_v38, %v4753_v58  ;;  %v5266_v58 = vld [vmem:[%s6087_s16 + $0x7] ss:$0 sm:$0xff] }
 0x98a   : > { %v4767_v55 = vmul.f32 %v4763_v44, %v4751_v10 }
 0x98b   : > { %v4771_v26 = vpack.c.bf16 %v4769_v2, %v4768_v27 }
 0x98c   : > { %v4770_v35 = vpack.c.bf16 %v4767_v55, %v4766_v57 }
 0x98e   : > { %5532 = vmatprep.mubr.msk.bf16.mxu0 %vm4808_vm7, %v4770_v35 }
 0x98f   : > { %5533 = vmatmul.mubr.msk.bf16.vlgmr.msra.gmra.mrb[20].mxu0 %vm4808_vm7, %v4771_v26 }
 0xa62   : > { %v5534_v28 = vpop.f32.mrb[20].mxu0 }
 0xa63   : > { %v4849_v6 = vpop.f32.mrb[21].mxu0  ;;  %v4858_v60 = vadd.f32 %v5534_v28, %v5258_v11 }
 0xa64   : > { %v4850_v48 = vadd.f32 %v5258_v11, %v4849_v6  ;;  %v5535_v32 = vpop.f32.mrb[22].mxu0 }
 0xa65   : > { %v4852_v4 = vpop.f32.mrb[23].mxu0  ;;  %v4861_v34 = vadd.f32 %v5535_v32, %v5258_v11  ;;  %v4866_v22 = vadd.f32 %v4858_v60, %v7053_v31 }
 0xa66   : > { %v4853_v42 = vadd.f32 %v5258_v11, %v4852_v4  ;;  %v4864_v5 = vadd.f32 %v4850_v48, %v7046_v1 }
 0xa67   : > { %v4867_v52 = vadd.f32 %v4861_v34, %v7055_v41  ;;  %v4874_v8 = vsel %vm572_vm2, %v4866_v22, 0.0 }
 0xa68   : > { %v4868_v12 = vsel %vm572_vm2, %v4864_v5, 0.0  ;;  %v4865_v39 = vadd.f32 %v4853_v42, %v7048_v23 }
 0xa69   : > { %4869 = vadd.xlane.f32.xlu1 %v4868_v12  ;;  %v4877_v37 = vsel %vm572_vm2, %v4867_v52, 0.0 }
 0xa6a   : > { %v4871_v15 = vsel %vm572_vm2, %v4865_v39, 0.0 }
 0xa6b   : > { %4872 = vadd.xlane.f32.xlu0 %v4871_v15 }
 0xa6d   : > { %4875 = vadd.xlane.f32.xlu1 %v4874_v8 }
 0xa6f   : > { %4878 = vadd.xlane.f32.xlu0 %v4877_v37 }
 0xaf6   : > { %v4870_v18 = vpop.xlane.xlu1 %4869 }
 0xaf7   : > { %v4880_v17 = vmul.f32 0.03125, %v4870_v18 }
 0xaf8   : > { %v4873_v1 = vpop.xlane.xlu0 %4872 }
 0xaf9   : > { %v4884_v51 = vsub.f32 %v4864_v5, %v4880_v17  ;;  %v4881_v9 = vmul.f32 0.03125, %v4873_v1 }
 0xafa   : > { %v4876_v23 = vpop.xlane.xlu1 %4875 }
 0xafb   : > { %v4885_v29 = vsub.f32 %v4865_v39, %v4881_v9  ;;  %v4882_v40 = vmul.f32 0.03125, %v4876_v23  ;;  %v4888_v0 = vmul.f32 %v4884_v51, %v4884_v51 }
 0xafc   : > { %v4879_v31 = vpop.xlane.xlu0 %4878 }
 0xafd   : > { %v4886_v16 = vsub.f32 %v4866_v22, %v4882_v40  ;;  %v4883_v43 = vmul.f32 0.03125, %v4879_v31  ;;  %v4892_v41 = vsel %vm572_vm2, %v4888_v0, 0.0  ;;  %v4889_v45 = vmul.f32 %v4885_v29, %v4885_v29 }
 0xafe   : > { %4893 = vadd.xlane.f32.xlu1 %v4892_v41 }
 0xaff   : > { %v4887_v61 = vsub.f32 %v4867_v52, %v4883_v43  ;;  %v4895_v30 = vsel %vm572_vm2, %v4889_v45, 0.0  ;;  %v4890_v3 = vmul.f32 %v4886_v16, %v4886_v16 }
 0xb00   : > { %4896 = vadd.xlane.f32.xlu0 %v4895_v30 }
 0xb01   : > { %v4898_v59 = vsel %vm572_vm2, %v4890_v3, 0.0  ;;  %v4891_v54 = vmul.f32 %v4887_v61, %v4887_v61 }
 0xb02   : > { %4899 = vadd.xlane.f32.xlu1 %v4898_v59 }
 0xb03   : > { %v4901_v7 = vsel %vm572_vm2, %v4891_v54, 0.0 }
 0xb04   : > { %4902 = vadd.xlane.f32.xlu0 %v4901_v7 }
 0xb8b   : > { %v4894_v14 = vpop.xlane.xlu1 %4893 }
 0xb8c   : > { %v4904_v21 = vmul.f32 0.03125, %v4894_v14 }
 0xb8d   : > { %v4897_v62 = vpop.xlane.xlu0 %4896 }
 0xb8e   : > { %v4908_v13 = vadd.f32 1e-05, %v4904_v21  ;;  %v4905_v49 = vmul.f32 0.03125, %v4897_v62 }
 0xb8f   : > { %v4900_v53 = vpop.xlane.xlu1 %4899 }
 0xb90   : > { %5817 = vrsqrt.f32 %v4908_v13  ;;  %v4909_v24 = vadd.f32 1e-05, %v4905_v49  ;;  %v4906_v36 = vmul.f32 0.03125, %v4900_v53  ;;  %v5268_v13 = vld [vmem:[%s7143_s3] ss:$0 sm:$0xff] (!%p5267_p8) }
 0xb91   : > { %v4903_v46 = vpop.xlane.xlu0 %4902  ;;  %v5269_v53 = vld [vmem:[%s7143_s3 + $0x1] ss:$0 sm:$0xff] (!%p5267_p8) }
 0xb92   : > { %5819 = vrsqrt.f32 %v4909_v24  ;;  %v4910_v50 = vadd.f32 1e-05, %v4906_v36  ;;  %v4907_v47 = vmul.f32 0.03125, %v4903_v46 }
 0xb94   : > { %5821 = vrsqrt.f32 %v4910_v50  ;;  %v4911_v19 = vadd.f32 1e-05, %v4907_v47 }
 0xb96   : > { %5823 = vrsqrt.f32 %v4911_v19 }
 0xb9a   : > { %v5818_v56 = vpop.eup %5817 }
 0xb9b   : > { %v4916_v25 = vmul.f32 %v5818_v56, %v4884_v51 }
 0xb9c   : > { %v5820_v20 = vpop.eup %5819 }
 0xb9d   : > { %v4924_v38 = vmul.f32 %v5265_v63, %v4916_v25  ;;  %v4917_v33 = vmul.f32 %v5820_v20, %v4885_v29 }
 0xb9e   : > { %v5822_v10 = vpop.eup %5821 }
 0xb9f   : > { %v4932_v44 = vadd.f32 %v5266_v58, %v4924_v38  ;;  %v4925_v27 = vmul.f32 %v5265_v63, %v4917_v33  ;;  %v4918_v2 = vmul.f32 %v5822_v10, %v4886_v16 }
 0xba0   : > { %v5824_v57 = vpop.eup %5823 }
 0xba1   : > { %4936 = vst.msk [vmem:[#allocation2] sm:$0xff] %vm572_vm2, %v4932_v44  ;;  %v4933_v55 = vadd.f32 %v5266_v58, %v4925_v27  ;;  %v4926_v26 = vmul.f32 %v5265_v63, %v4918_v2  ;;  %v4919_v35 = vmul.f32 %v5824_v57, %v4887_v61  ;;  %4943 = sbr.rel (%p5267_p8) target bundleno = 3299 (0xce3), region = 68  ;;  %v4946_v60 = vsel (!%p5267_p8), %vm572_vm2, %v4932_v44, 0.0 }
 0xba2   : > { %4947 = vadd.xlane.f32.xlu0 (!%p5267_p8), %v4946_v60 }
 0xba3   : > { %4937 = vst.msk [vmem:[#allocation2 + $0x8] sm:$0xff] %vm572_vm2, %v4933_v55  ;;  %v4934_v11 = vadd.f32 %v5266_v58, %v4926_v26  ;;  %v4927_v28 = vmul.f32 %v5265_v63, %v4919_v35  ;;  %v4949_v32 = vsel (!%p5267_p8), %vm572_vm2, %v4933_v55, 0.0 }
 0xba5   : > { %4938 = vst.msk [vmem:[#allocation2 + $0x10] sm:$0xff] %vm572_vm2, %v4934_v11  ;;  %v4935_v6 = vadd.f32 %v5266_v58, %v4927_v28  ;;  %v4952_v48 = vsel (!%p5267_p8), %vm572_vm2, %v4934_v11, 0.0 }
 0xba6   : > { %4953 = vadd.xlane.f32.xlu1 (!%p5267_p8), %v4952_v48  ;;  %4950 = vadd.xlane.f32.xlu0 (!%p5267_p8), %v4949_v32 }
 0xba7   : > { %4939 = vst.msk [vmem:[#allocation2 + $0x18] sm:$0xff] %vm572_vm2, %v4935_v6  ;;  %v4955_v4 = vsel (!%p5267_p8), %vm572_vm2, %v4935_v6, 0.0 }
 0xbaa   : > { %4956 = vadd.xlane.f32.xlu1 %v4955_v4 }
 0xc2f   : > { %v4948_v34 = vpop.xlane.xlu0 %4947 }
 0xc30   : > { %v4958_v5 = vmul.f32 0.03125, %v4948_v34 }
 0xc32   : > { %v4962_v39 = vsub.f32 %v4932_v44, %v4958_v5 }
 0xc33   : > { %v4954_v42 = vpop.xlane.xlu1 %4953  ;;  %v4951_v15 = vpop.xlane.xlu0 %4950 }
 0xc34   : > { %v4960_v12 = vmul.f32 0.03125, %v4954_v42  ;;  %v4959_v8 = vmul.f32 0.03125, %v4951_v15  ;;  %v4966_v18 = vmul.f32 %v4962_v39, %v4962_v39 }
 0xc36   : > { %v4964_v22 = vsub.f32 %v4934_v11, %v4960_v12  ;;  %v4963_v1 = vsub.f32 %v4933_v55, %v4959_v8  ;;  %v4970_v9 = vsel %vm572_vm2, %v4966_v18, 0.0 }
 0xc37   : > { %v4957_v52 = vpop.xlane.xlu1 %4956  ;;  %4971 = vadd.xlane.f32.xlu0 %v4970_v9 }
 0xc38   : > { %v4961_v37 = vmul.f32 0.03125, %v4957_v52  ;;  %v4968_v17 = vmul.f32 %v4964_v22, %v4964_v22  ;;  %v4967_v29 = vmul.f32 %v4963_v1, %v4963_v1 }
 0xc3a   : > { %v4965_v51 = vsub.f32 %v4935_v6, %v4961_v37  ;;  %v4976_v23 = vsel %vm572_vm2, %v4968_v17, 0.0  ;;  %v4973_v0 = vsel %vm572_vm2, %v4967_v29, 0.0 }
 0xc3b   : > { %4977 = vadd.xlane.f32.xlu0 %v4976_v23  ;;  %4974 = vadd.xlane.f32.xlu1 %v4973_v0 }
 0xc3c   : > { %v4969_v40 = vmul.f32 %v4965_v51, %v4965_v51 }
 0xc3e   : > { %v4979_v31 = vsel %vm572_vm2, %v4969_v40, 0.0 }
 0xc3f   : > { %4980 = vadd.xlane.f32.xlu1 %v4979_v31 }
 0xcc4   : > { %v4972_v16 = vpop.xlane.xlu0 %4971 }
 0xcc5   : > { %v4982_v43 = vmul.f32 0.03125, %v4972_v16 }
 0xcc7   : > { %v4986_v41 = vadd.f32 1e-05, %v4982_v43 }
 0xcc8   : > { %v4975_v45 = vpop.xlane.xlu1 %4974  ;;  %v4978_v61 = vpop.xlane.xlu0 %4977 }
 0xcc9   : > { %5829 = vrsqrt.f32 %v4986_v41  ;;  %v4983_v30 = vmul.f32 0.03125, %v4975_v45  ;;  %v4984_v3 = vmul.f32 0.03125, %v4978_v61 }
 0xccb   : > { %v4987_v59 = vadd.f32 1e-05, %v4983_v30  ;;  %v4988_v54 = vadd.f32 1e-05, %v4984_v3 }
 0xccc   : > { %v4981_v7 = vpop.xlane.xlu1 %4980 }
 0xccd   : > { %5831 = vrsqrt.f32 %v4987_v59  ;;  %v4985_v14 = vmul.f32 0.03125, %v4981_v7 }
 0xcce   : > { %5833 = vrsqrt.f32 %v4988_v54 }
 0xccf   : > { %v4989_v21 = vadd.f32 1e-05, %v4985_v14 }
 0xcd1   : > { %5835 = vrsqrt.f32 %v4989_v21 }
 0xcd3   : > { %v5830_v62 = vpop.eup %5829 }
 0xcd4   : > { %v4994_v49 = vmul.f32 %v5830_v62, %v4962_v39 }
 0xcd6   : > { %v5002_v24 = vmul.f32 %v5268_v13, %v4994_v49 }
 0xcd7   : > { %v5832_v36 = vpop.eup %5831 }
 0xcd8   : > { %v5834_v46 = vpop.eup %5833  ;;  %v5010_v50 = vadd.f32 %v5269_v53, %v5002_v24  ;;  %v4995_v47 = vmul.f32 %v5832_v36, %v4963_v1 }
 0xcd9   : > { %v4996_v19 = vmul.f32 %v5834_v46, %v4964_v22 }
 0xcda   : > { %5014 = vst.msk [vmem:[#allocation6] sm:$0xff] %vm572_vm2, %v5010_v50  ;;  %v5003_v56 = vmul.f32 %v5268_v13, %v4995_v47 }
 0xcdb   : > { %v5836_v63 = vpop.eup %5835  ;;  %v5004_v25 = vmul.f32 %v5268_v13, %v4996_v19 }
 0xcdc   : > { %v5011_v20 = vadd.f32 %v5269_v53, %v5003_v56  ;;  %v4997_v58 = vmul.f32 %v5836_v63, %v4965_v51 }
 0xcdd   : > { %v5012_v38 = vadd.f32 %v5269_v53, %v5004_v25 }
 0xcde   : > { %5015 = vst.msk [vmem:[#allocation6 + $0x8] sm:$0xff] %vm572_vm2, %v5011_v20  ;;  %v5005_v33 = vmul.f32 %v5268_v13, %v4997_v58 }
 0xcdf   : > { %5016 = vst.msk [vmem:[#allocation6 + $0x10] sm:$0xff] %vm572_vm2, %v5012_v38 }
 0xce0   : > { %v5013_v10 = vadd.f32 %v5269_v53, %v5005_v33 }
 0xce2   : > { %5017 = vst.msk [vmem:[#allocation6 + $0x18] sm:$0xff] %vm572_vm2, %v5013_v10 }
 0xce3 PF: > { %p5645_p10 = scmp.eq.s32.totalorder %s6021_s13, 1  ;;  %s5950_s25 = smov [#allocation6]  }
 0xce4   : > { %s5024_s12 = sshll.u32 %s5950_s25, 4  ;;  %s5025_s12 = int_to_ptr.vmem [resolvable:$true] %s5024_s12 }
 0xce5   : > { %s5867_s29 = scalar_lea.vmem %s5025_s12, 512  ;;  %p5874_p13 = scmp.lt.s32.totalorder %s5025_s12, %s5025_s12 }
 0xce6   : > { %p5868_p5 = scmp.ne.s32.totalorder %s5025_s12, %s5867_s29  ;;  %p5875_p1 = scmp.lt.s32.totalorder %s5867_s29, %s5867_s29 }
 0xce8   : > { %p5869_p6 = pnand %p5868_p5, %p5645_p10  ;;  %p5876_p2 = por %p5875_p1, %p5874_p13 }
 0xcea   : > { %p5870_p11 = pneg %p5869_p6 }
 0xcec   : > { %p5877_p3 = pnand %p5876_p2, %p5870_p11 }
 0xcee   : > { %5880 = shalt.err (!%p5877_p3)
}
 0xcef   : > { %s5881_s27 = scalar_lea.hbm %s7149_s9, 512 }
 0xcf0   : > { %p5882_p0 = scmp.ne.s32.totalorder %s7149_s9, %s5881_s27  ;;  %p5887_p9 = scmp.lt.u32.totalorder %s5881_s27, %s7149_s9 }
 0xcf2   : > { %p5883_p4 = pnand %p5882_p0, %p5645_p10 }
 0xcf4   : > { %p5884_p12 = pneg %p5883_p4 }
 0xcf6   : > { %p5889_p7 = pnand %p5887_p9, %p5884_p12 }
 0xcf8   : > { %5892 = shalt.err (!%p5889_p7)
}
 0xcf9   : > { %s5951_s26 = smov 128  }
 0xcfa   : > { %5637 = dma.vmem_to_hbm [thread:$0]  (%p5645_p10), %s5025_s12, 512, %s7149_s9, [#allocation5], %s5951_s26, %s5951_s26, %s5947_s23  }
 0xcfb   : > { %5914 = dma.done.wait (%p5645_p10), [#allocation5], 512  }
 0xcfc   : > { %5916 = vsyncadd (%p5645_p10), [#allocation5], 4294966784 }
 0xcfd PF: > { %p20_p8 = scmp.ge.s32.totalorder %s6024_s14, 4   ;;  %s7156_s30 = smov %s5923_s10 }
 0xcfe   : > { %s7157_s10 = smov %s5927_s11  ;;  %s7158_s11 = smov %s6034_s17 }
 0xcff   : > { %s7159_s12 = smov %s6024_s14  ;;  %22 = sbr.rel (!%p20_p8) target bundleno = 4 (0x4), region = 113 }
 0xd06   :  { %5040 = vsyncpa [#allocation4], 1 }
 0xd07   :  { %5042 = vsyncpa [#allocation4 + $0x1], 1 }
 0xd08   :  { %5043 = vsyncpa [#allocation5], 1 }
 0xd09   :  { %5045 = vsyncpa [#allocation5 + $0x1], 1 }

</bundles_post_ra>
